<compile_context>
chip_gen: v5e
topology: v5e:2x2
jax: 0.10.0
libtpu: 0.0.40
codegen_flags: <defaults>
</compile_context>

<pallas_src>
import jax
import jax.numpy as jnp
from jax.experimental import pallas as pl

EPS = 1e-5


def conv_bn_kernel(x_ref, w_ref, gb_ref, o_ref):
    # x_ref:  (Cin, M)     f32  -- native-layout pixels, M = N*H*W
    # w_ref:  (Cout, Cin)  f32  -- 1x1 conv weight
    # gb_ref: (2*Cout, 1)  f32  -- gamma stacked over beta
    # o_ref:  (Cout, M)    f32
    x = x_ref[...]
    w = w_ref[...]

    # 1x1 convolution == matmul on the MXU (f32 in, f32 accumulation).
    y = jnp.dot(w, x, preferred_element_type=jnp.float32)       # (Cout, M)

    cout = o_ref.shape[0]
    inv_m = jnp.float32(1.0 / y.shape[1])

    # Two-pass BatchNorm statistics over N*H*W (lane-axis reduce on the XLU):
    # mean first, then biased variance of the centered values (no E[y^2]
    # cancellation). `y` is dead once `d` exists, limiting live vregs.
    mean = jnp.sum(y, axis=1, keepdims=True) * inv_m             # (Cout, 1)
    d = y - mean                                                 # (Cout, M)
    var = jnp.sum(d * d, axis=1, keepdims=True) * inv_m          # (Cout, 1)
    inv_std = jax.lax.rsqrt(var + jnp.float32(EPS))

    gb = gb_ref[...]                                             # (2*Cout, 1)
    gamma = gb[:cout]
    beta = gb[cout:]

    # out = (y - mean) * (gamma / sqrt(var + eps)) + beta
    o_ref[...] = d * (gamma * inv_std) + beta


def conv2d_batchnorm(x_nchw, weight, gamma, beta):
    """x_nchw: (N, Cin, H, W); weight: (Cout, Cin, 1, 1); gamma/beta: (Cout,)."""
    N, Cin, H, W = x_nchw.shape
    Cout = weight.shape[0]
    M = N * H * W

    # NCHW -> (Cin, N*H*W).  For N == 1 (the module's case) the transpose is
    # over a size-1 axis, i.e. a pure reshape with no HBM round trip.
    # NOTE: for N > 1 this is a real HBM transpose; a batched deployment
    # should instead grid over N with cross-block stat accumulation.
    x2d = (x_nchw.reshape(N, Cin, H * W)
                 .transpose(1, 0, 2)
                 .reshape(Cin, M)
                 .astype(jnp.float32))
    w2d = weight.reshape(Cout, Cin).astype(jnp.float32)
    gb = jnp.concatenate(
        [gamma.reshape(Cout, 1), beta.reshape(Cout, 1)], axis=0
    ).astype(jnp.float32)                                        # (2*Cout, 1)

    cost = pl.CostEstimate(
        flops=2 * Cout * Cin * M,
        transcendentals=Cout,                     # rsqrt per output channel
        bytes_accessed=4 * (Cin * M + Cout * Cin + 2 * Cout + Cout * M),
    )

    out2d = pl.pallas_call(
        conv_bn_kernel,
        out_shape=jax.ShapeDtypeStruct((Cout, M), jnp.float32),
        in_specs=[
            pl.BlockSpec((Cin, M), lambda: (0, 0)),
            pl.BlockSpec((Cout, Cin), lambda: (0, 0)),
            pl.BlockSpec((2 * Cout, 1), lambda: (0, 0)),
        ],
        out_specs=pl.BlockSpec((Cout, M), lambda: (0, 0)),
        cost_estimate=cost,
    )(x2d, w2d, gb)

    # (Cout, N*H*W) -> NCHW (again a pure reshape for N == 1).
    return out2d.reshape(Cout, N, H, W).transpose(1, 0, 2, 3)


def reference(x_nchw, weight, gamma, beta):
    """Pure-JAX f32 reference (training-mode BN forward) for a sanity check."""
    N, Cin, H, W = x_nchw.shape
    Cout = weight.shape[0]
    x2d = x_nchw.reshape(N, Cin, H * W).transpose(1, 0, 2).reshape(Cin, -1)
    y = weight.reshape(Cout, Cin) @ x2d                          # (Cout, M)
    mean = jnp.mean(y, axis=1, keepdims=True)
    var = jnp.mean((y - mean) ** 2, axis=1, keepdims=True)       # biased
    yn = (y - mean) / jnp.sqrt(var + EPS) * gamma[:, None] + beta[:, None]
    return yn.reshape(Cout, N, H, W).transpose(1, 0, 2, 3)


if __name__ == "__main__":
    key = jax.random.PRNGKey(0)
    k_x, k_w = jax.random.split(key)

    # Shapes implied by the module: x157 = (1, 528, 14, 14), Conv2d(528 -> 88).
    N, Cin, H, W, Cout = 1, 528, 14, 14, 88

    x = jax.random.normal(k_x, (N, Cin, H, W), dtype=jnp.float32)
    # Deterministic synthetic parameters matching the module's shapes.
    weight = jax.random.normal(k_w, (Cout, Cin, 1, 1), dtype=jnp.float32) * 0.05
    gamma = jnp.ones((Cout,), dtype=jnp.float32)    # BatchNorm2d default init
    beta = jnp.zeros((Cout,), dtype=jnp.float32)

    out = jax.jit(conv2d_batchnorm)(x, weight, gamma, beta)
    jax.block_until_ready(out)

    ref = reference(x, weight, gamma, beta)
    assert out.shape == (N, Cout, H, W)
    # Full-f32 pipeline + two-pass variance: tolerance covers whichever f32
    # MXU accumulation path Mosaic picks; expected error is far smaller.
    assert jnp.allclose(out, ref, atol=1e-2, rtol=1e-2)

    print("KERNEL_OK")
</pallas_src>

<mosaic_0001>
module attributes {stable_mosaic.version = 11 : i64} {
  func.func @conv_bn_kernel(%arg0: memref<528x196xf32, #tpu.memory_space<vmem>>, %arg1: memref<88x528xf32, #tpu.memory_space<vmem>>, %arg2: memref<176x1xf32, #tpu.memory_space<vmem>>, %arg3: memref<88x196xf32, #tpu.memory_space<vmem>>) attributes {dimension_semantics = [], scalar_prefetch = 0 : i64, scratch_operands = 0 : i64, tpu.core_type = #tpu.core_type<tc>} {
    %c0 = arith.constant 0 : index
    %c0_0 = arith.constant 0 : index
    %0 = vector.load %arg0[%c0, %c0_0] : memref<528x196xf32, #tpu.memory_space<vmem>>, vector<528x196xf32>
    %c0_1 = arith.constant 0 : index
    %c0_2 = arith.constant 0 : index
    %1 = vector.load %arg1[%c0_1, %c0_2] : memref<88x528xf32, #tpu.memory_space<vmem>>, vector<88x528xf32>
    %cst = arith.constant dense<0.000000e+00> : vector<88x196xf32>
    %2 = tpu.matmul %1, %0, %cst {dimension_numbers = #tpu.dot_dimension_numbers<[1], [0], [0], [1], [0, 0, 1, 1], [], []>} : vector<88x528xf32>, vector<528x196xf32>, vector<88x196xf32> -> vector<88x196xf32>
    %cst_3 = arith.constant dense<0.000000e+00> : vector<88xf32>
    %3 = vector.multi_reduction <add>, %2, %cst_3 [1] : vector<88x196xf32> to vector<88xf32>
    %4 = vector.shape_cast %3 : vector<88xf32> to vector<88x1xf32>
    %cst_4 = arith.constant 0.00510204071 : f32
    %5 = vector.broadcast %cst_4 : f32 to vector<88x1xf32>
    %6 = arith.mulf %4, %5 : vector<88x1xf32>
    %7 = vector.broadcast %6 : vector<88x1xf32> to vector<88x196xf32>
    %8 = arith.subf %2, %7 : vector<88x196xf32>
    %9 = arith.mulf %8, %8 : vector<88x196xf32>
    %cst_5 = arith.constant dense<0.000000e+00> : vector<88xf32>
    %10 = vector.multi_reduction <add>, %9, %cst_5 [1] : vector<88x196xf32> to vector<88xf32>
    %11 = vector.shape_cast %10 : vector<88xf32> to vector<88x1xf32>
    %cst_6 = arith.constant 0.00510204071 : f32
    %12 = vector.broadcast %cst_6 : f32 to vector<88x1xf32>
    %13 = arith.mulf %11, %12 : vector<88x1xf32>
    %cst_7 = arith.constant 9.99999974E-6 : f32
    %14 = vector.broadcast %cst_7 : f32 to vector<88x1xf32>
    %15 = arith.addf %13, %14 : vector<88x1xf32>
    %16 = math.rsqrt %15 : vector<88x1xf32>
    %c0_8 = arith.constant 0 : index
    %c0_9 = arith.constant 0 : index
    %17 = vector.load %arg2[%c0_8, %c0_9] : memref<176x1xf32, #tpu.memory_space<vmem>>, vector<176x1xf32>
    %18 = vector.extract_strided_slice %17 {offsets = [0, 0], sizes = [88, 1], strides = [1, 1]} : vector<176x1xf32> to vector<88x1xf32>
    %19 = vector.extract_strided_slice %17 {offsets = [88, 0], sizes = [88, 1], strides = [1, 1]} : vector<176x1xf32> to vector<88x1xf32>
    %20 = arith.mulf %18, %16 : vector<88x1xf32>
    %21 = vector.broadcast %20 : vector<88x1xf32> to vector<88x196xf32>
    %22 = arith.mulf %8, %21 : vector<88x196xf32>
    %23 = vector.broadcast %19 : vector<88x1xf32> to vector<88x196xf32>
    %24 = arith.addf %22, %23 : vector<88x196xf32>
    %c0_10 = arith.constant 0 : index
    %c0_11 = arith.constant 0 : index
    %25 = vector.load %arg3[%c0_10, %c0_11] : memref<88x196xf32, #tpu.memory_space<vmem>>, vector<88x196xf32>
    tpu.vector_store %arg3[%c0_10, %c0_11], %24 {strides = array<i32>} : memref<88x196xf32, #tpu.memory_space<vmem>>, vector<88x196xf32>,
    return
  }
}

</mosaic_0001>

<bundles_post_ra>
// kernel: conv2d_batchnorm.1
= control target key start
LH: loop header
LB: loop body
LE: loop exit
PB: predicated region body
PF: predicated region fallthrough
CT: control target
= control target key end

     0   :  { %vm201_vm0 = vcmask 130048   ;;  %vm735_vm1 = vcmask 556032   ;;  %s2573_s0 = inlined_call_operand.vmem [shape: f32[528,196], index: 0, kind: input, shape index: {}]   ;;  %s2574_s1 = inlined_call_operand.vmem [shape: f32[88,528], index: 1, kind: input, shape index: {}]   ;;  %s2575_s2 = inlined_call_operand.vmem [shape: f32[176,1], index: 2, kind: input, shape index: {}]   ;;  %s2576_s3 = inlined_call_operand.vmem [shape: f32[88,196], index: 3, kind: output, shape index: {}]  }
   0x1   :  { %v44_v0 = vld [vmem:[%s2573_s0 + $0xf0] sm:$0xff]  ;;  %v42_v2 = vld [vmem:[%s2573_s0 + $0xe0] sm:$0xff]  ;;  %v1429_v33 = vld [vmem:[%s2574_s1 + $0xf8] sm:$0xff] }
   0x2   :  { %v76_v1 = vld [vmem:[%s2573_s0 + $0x1f0] sm:$0xff]  ;;  %1246 = vmatpush.msra.mxu2 %v44_v0  ;;  %v74_v3 = vld [vmem:[%s2573_s0 + $0x1e0] sm:$0xff]  ;;  %235 = vmatpush.msra.mxu0 %v44_v0  ;;  %v1444_v36 = vld [vmem:[%s2574_s1 + $0x8] sm:$0xff] }
   0x3   :  { %1262 = vmatpush.msra.mxu3 %v76_v1  ;;  %285 = vmatpush.msra.mxu1 %v76_v1  ;;  %v40_v4 = vld [vmem:[%s2573_s0 + $0xd0] sm:$0xff]  ;;  %v38_v6 = vld [vmem:[%s2573_s0 + $0xc0] sm:$0xff]  ;;  %v45_v40 = vld [vmem:[%s2573_s0 + $0xf8] sm:$0xff] }
   0x4   :  { %v72_v5 = vld [vmem:[%s2573_s0 + $0x1d0] sm:$0xff]  ;;  %1247 = vmatpush.msra.mxu2 %v42_v2  ;;  %236 = vmatpush.msra.mxu0 %v42_v2  ;;  %v70_v7 = vld [vmem:[%s2573_s0 + $0x1c0] sm:$0xff]  ;;  %v43_v45 = vld [vmem:[%s2573_s0 + $0xe8] sm:$0xff] }
   0x5   :  { %1263 = vmatpush.msra.mxu3 %v74_v3  ;;  %286 = vmatpush.msra.mxu1 %v74_v3  ;;  %v36_v8 = vld [vmem:[%s2573_s0 + $0xb0] sm:$0xff]  ;;  %v34_v10 = vld [vmem:[%s2573_s0 + $0xa0] sm:$0xff]  ;;  %v1478_v46 = vld [vmem:[%s2574_s1 + $0x118] sm:$0xff] }
   0x6   :  { %1248 = vmatpush.msra.mxu2 %v40_v4  ;;  %237 = vmatpush.msra.mxu0 %v40_v4  ;;  %v68_v9 = vld [vmem:[%s2573_s0 + $0x1b0] sm:$0xff]  ;;  %v66_v11 = vld [vmem:[%s2573_s0 + $0x1a0] sm:$0xff]  ;;  %v1494_v50 = vld [vmem:[%s2574_s1 + $0x28] sm:$0xff] }
   0x7   :  { %1264 = vmatpush.msra.mxu3 %v72_v5  ;;  %287 = vmatpush.msra.mxu1 %v72_v5  ;;  %v32_v12 = vld [vmem:[%s2573_s0 + $0x90] sm:$0xff]  ;;  %v30_v14 = vld [vmem:[%s2573_s0 + $0x80] sm:$0xff]  ;;  %v41_v51 = vld [vmem:[%s2573_s0 + $0xd8] sm:$0xff] }
   0x8   :  { %1249 = vmatpush.msra.mxu2 %v38_v6  ;;  %238 = vmatpush.msra.mxu0 %v38_v6  ;;  %v64_v13 = vld [vmem:[%s2573_s0 + $0x190] sm:$0xff]  ;;  %v62_v15 = vld [vmem:[%s2573_s0 + $0x180] sm:$0xff]  ;;  %v39_v55 = vld [vmem:[%s2573_s0 + $0xc8] sm:$0xff] }
   0x9   :  { %1265 = vmatpush.msra.mxu3 %v70_v7  ;;  %288 = vmatpush.msra.mxu1 %v70_v7  ;;  %v28_v16 = vld [vmem:[%s2573_s0 + $0x70] sm:$0xff]  ;;  %v26_v18 = vld [vmem:[%s2573_s0 + $0x60] sm:$0xff]  ;;  %v37_v58 = vld [vmem:[%s2573_s0 + $0xb8] sm:$0xff] }
   0xa   :  { %1250 = vmatpush.msra.mxu2 %v36_v8  ;;  %239 = vmatpush.msra.mxu0 %v36_v8  ;;  %v60_v17 = vld [vmem:[%s2573_s0 + $0x170] sm:$0xff]  ;;  %v58_v19 = vld [vmem:[%s2573_s0 + $0x160] sm:$0xff]  ;;  %v1537_v61 = vld [vmem:[%s2574_s1 + $0x148] sm:$0xff] }
   0xb   :  { %1266 = vmatpush.msra.mxu3 %v68_v9  ;;  %289 = vmatpush.msra.mxu1 %v68_v9  ;;  %v24_v20 = vld [vmem:[%s2573_s0 + $0x50] sm:$0xff]  ;;  %v22_v22 = vld [vmem:[%s2573_s0 + $0x40] sm:$0xff]  ;;  %v35_v1 = vld [vmem:[%s2573_s0 + $0xa8] sm:$0xff] }
   0xc   :  { %1251 = vmatpush.msra.mxu2 %v34_v10  ;;  %240 = vmatpush.msra.mxu0 %v34_v10  ;;  %v56_v21 = vld [vmem:[%s2573_s0 + $0x150] sm:$0xff]  ;;  %v54_v23 = vld [vmem:[%s2573_s0 + $0x140] sm:$0xff]  ;;  %v1558_v2 = vld [vmem:[%s2574_s1 + $0x58] sm:$0xff] }
   0xd   :  { %1267 = vmatpush.msra.mxu3 %v66_v11  ;;  %290 = vmatpush.msra.mxu1 %v66_v11  ;;  %v20_v24 = vld [vmem:[%s2573_s0 + $0x30] sm:$0xff]  ;;  %v18_v26 = vld [vmem:[%s2573_s0 + $0x20] sm:$0xff]  ;;  %v33_v5 = vld [vmem:[%s2573_s0 + $0x98] sm:$0xff] }
   0xe   :  { %1252 = vmatpush.msra.mxu2 %v32_v12  ;;  %241 = vmatpush.msra.mxu0 %v32_v12  ;;  %v52_v25 = vld [vmem:[%s2573_s0 + $0x130] sm:$0xff]  ;;  %v50_v27 = vld [vmem:[%s2573_s0 + $0x120] sm:$0xff]  ;;  %v141_v7 = vld [vmem:[%s2573_s0 + $0x3f8] sm:$0xff] }
   0xf   :  { %1268 = vmatpush.msra.mxu3 %v64_v13  ;;  %291 = vmatpush.msra.mxu1 %v64_v13  ;;  %v16_v28 = vld [vmem:[%s2573_s0 + $0x10] sm:$0xff]  ;;  %v14_v30 = vld [vmem:[%s2573_s0] sm:$0xff]  ;;  %v31_v9 = vld [vmem:[%s2573_s0 + $0x88] sm:$0xff] }
  0x10   :  { %1253 = vmatpush.msra.mxu2 %v30_v14  ;;  %242 = vmatpush.msra.mxu0 %v30_v14  ;;  %v48_v29 = vld [vmem:[%s2573_s0 + $0x110] sm:$0xff]  ;;  %v46_v31 = vld [vmem:[%s2573_s0 + $0x100] sm:$0xff]  ;;  %v1589_v11 = vld [vmem:[%s2574_s1 + $0x168] sm:$0xff] }
  0x11   :  { %1269 = vmatpush.msra.mxu3 %v62_v15  ;;  %292 = vmatpush.msra.mxu1 %v62_v15  ;;  %v1424_v32 = vld [vmem:[%s2574_s1 + $0xf0] sm:$0xff]  ;;  %v1437_v35 = vld [vmem:[%s2574_s1] sm:$0xff]  ;;  %v1605_v15 = vld [vmem:[%s2574_s1 + $0x78] sm:$0xff] }
  0x12   :  { %1254 = vmatpush.msra.mxu2 %v28_v16  ;;  %243 = vmatpush.msra.mxu0 %v28_v16  ;;  %v108_v34 = vld [vmem:[%s2573_s0 + $0x2f0] sm:$0xff]  ;;  %v106_v39 = vld [vmem:[%s2573_s0 + $0x2e0] sm:$0xff]  ;;  %v29_v16 = vld [vmem:[%s2573_s0 + $0x78] sm:$0xff] }
  0x13   :  { %1270 = vmatpush.msra.mxu3 %v60_v17  ;;  %293 = vmatpush.msra.mxu1 %v60_v17  ;;  %v140_v37 = vld [vmem:[%s2573_s0 + $0x3f0] sm:$0xff]  ;;  %v138_v41 = vld [vmem:[%s2573_s0 + $0x3e0] sm:$0xff] }
  0x14   :  { %1255 = vmatpush.msra.mxu2 %v26_v18  ;;  %244 = vmatpush.msra.mxu0 %v26_v18  ;;  %v144_v38 = vld [vmem:[%s2573_s0 + $0x410] sm:$0xff]  ;;  %v142_v43 = vld [vmem:[%s2573_s0 + $0x400] sm:$0xff] }
  0x15   :  { %1271 = vmatpush.msra.mxu3 %v58_v19  ;;  %294 = vmatpush.msra.mxu1 %v58_v19  ;;  %v104_v42 = vld [vmem:[%s2573_s0 + $0x2d0] sm:$0xff]  ;;  %v1483_v47 = vld [vmem:[%s2574_s1 + $0x120] sm:$0xff] }
  0x16   :  { %1256 = vmatpush.msra.mxu2 %v24_v20  ;;  %245 = vmatpush.msra.mxu0 %v24_v20  ;;  %v136_v44 = vld [vmem:[%s2573_s0 + $0x3d0] sm:$0xff]  ;;  %v102_v48 = vld [vmem:[%s2573_s0 + $0x2c0] sm:$0xff]  ;;  %v27_v20 = vld [vmem:[%s2573_s0 + $0x68] sm:$0xff] }
  0x17   :  { %1272 = vmatpush.msra.mxu3 %v56_v21  ;;  %295 = vmatpush.msra.mxu1 %v56_v21  ;;  %v134_v49 = vld [vmem:[%s2573_s0 + $0x3c0] sm:$0xff]  ;;  %v1504_v52 = vld [vmem:[%s2574_s1 + $0x30] sm:$0xff] }
  0x18   :  { %1257 = vmatpush.msra.mxu2 %v22_v22  ;;  %246 = vmatpush.msra.mxu0 %v22_v22  ;;  %v100_v53 = vld [vmem:[%s2573_s0 + $0x2b0] sm:$0xff]  ;;  %v98_v56 = vld [vmem:[%s2573_s0 + $0x2a0] sm:$0xff]  ;;  %v139_v22 = vld [vmem:[%s2573_s0 + $0x3e8] sm:$0xff] }
  0x19   :  { %1273 = vmatpush.msra.mxu3 %v54_v23  ;;  %296 = vmatpush.msra.mxu1 %v54_v23  ;;  %v132_v54 = vld [vmem:[%s2573_s0 + $0x3b0] sm:$0xff]  ;;  %v130_v57 = vld [vmem:[%s2573_s0 + $0x3a0] sm:$0xff] }
  0x1a   :  { %1258 = vmatpush.msra.mxu2 %v20_v24  ;;  %247 = vmatpush.msra.mxu0 %v20_v24  ;;  %v96_v59 = vld [vmem:[%s2573_s0 + $0x290] sm:$0xff]  ;;  %v1532_v60 = vld [vmem:[%s2574_s1 + $0x140] sm:$0xff]  ;;  %v25_v24 = vld [vmem:[%s2573_s0 + $0x58] sm:$0xff] }
  0x1b   :  { %1274 = vmatpush.msra.mxu3 %v52_v25  ;;  %297 = vmatpush.msra.mxu1 %v52_v25  ;;  %v128_v62 = vld [vmem:[%s2573_s0 + $0x390] sm:$0xff]  ;;  %v94_v63 = vld [vmem:[%s2573_s0 + $0x280] sm:$0xff] }
  0x1c   :  { %1259 = vmatpush.msra.mxu2 %v18_v26  ;;  %248 = vmatpush.msra.mxu0 %v18_v26  ;;  %v1548_v0 = vld [vmem:[%s2574_s1 + $0x50] sm:$0xff]  ;;  %v126_v4 = vld [vmem:[%s2573_s0 + $0x380] sm:$0xff]  ;;  %v137_v26 = vld [vmem:[%s2573_s0 + $0x3d8] sm:$0xff] }
  0x1d   :  { %1275 = vmatpush.msra.mxu3 %v50_v27  ;;  %298 = vmatpush.msra.mxu1 %v50_v27  ;;  %v92_v3 = vld [vmem:[%s2573_s0 + $0x270] sm:$0xff]  ;;  %v90_v6 = vld [vmem:[%s2573_s0 + $0x260] sm:$0xff] }
  0x1e   :  { %1260 = vmatpush.msra.mxu2 %v16_v28  ;;  %249 = vmatpush.msra.mxu0 %v16_v28  ;;  %v124_v8 = vld [vmem:[%s2573_s0 + $0x370] sm:$0xff]  ;;  %v122_v13 = vld [vmem:[%s2573_s0 + $0x360] sm:$0xff]  ;;  %v1654_v28 = vld [vmem:[%s2574_s1 + $0x198] sm:$0xff] }
  0x1f   :  { %1276 = vmatpush.msra.mxu3 %v48_v29  ;;  %299 = vmatpush.msra.mxu1 %v48_v29  ;;  %v88_v10 = vld [vmem:[%s2573_s0 + $0x250] sm:$0xff]  ;;  %v86_v14 = vld [vmem:[%s2573_s0 + $0x240] sm:$0xff] }
  0x20   :  { %1261 = vmatpush.msra.mxu2 %v14_v30  ;;  %250 = vmatpush.msra.mxu0 %v14_v30  ;;  %v1594_v12 = vld [vmem:[%s2574_s1 + $0x170] sm:$0xff]  ;;  %v1615_v17 = vld [vmem:[%s2574_s1 + $0x80] sm:$0xff] }
  0x21   :  { %1277 = vmatpush.msra.mxu3 %v46_v31  ;;  %269 = vmatmul.f32.vlgmr.msra.gmra.mxu2 %v1424_v32  ;;  %v120_v18 = vld [vmem:[%s2573_s0 + $0x350] sm:$0xff]  ;;  %v118_v21 = vld [vmem:[%s2573_s0 + $0x340] sm:$0xff] }
  0x22   :  { %319 = vmatmul.f32.vlgmr.msra.gmra.mxu3 %v1429_v33  ;;  %335 = vmatpush.msrb.mxu2 %v108_v34  ;;  %v84_v19 = vld [vmem:[%s2573_s0 + $0x230] sm:$0xff]  ;;  %v82_v23 = vld [vmem:[%s2573_s0 + $0x220] sm:$0xff]  ;;  %v23_v34 = vld [vmem:[%s2573_s0 + $0x48] sm:$0xff] }
  0x23   :  { %300 = vmatpush.msra.mxu1 %v46_v31  ;;  %251 = vmatmul.f32.vlgmr.msra.gmra.mxu0 %v1437_v35  ;;  %v116_v25 = vld [vmem:[%s2573_s0 + $0x330] sm:$0xff]  ;;  %v114_v30 = vld [vmem:[%s2573_s0 + $0x320] sm:$0xff] }
  0x24   :  { %301 = vmatmul.f32.vlgmr.msra.gmra.mxu1 %v1444_v36  ;;  %385 = vmatpush.msrb.mxu3 %v140_v37  ;;  %v1649_v27 = vld [vmem:[%s2574_s1 + $0x190] sm:$0xff]  ;;  %v1665_v31 = vld [vmem:[%s2574_s1 + $0xa0] sm:$0xff]  ;;  %v1675_v37 = vld [vmem:[%s2574_s1 + $0xa8] sm:$0xff] }
  0x25   :  { %449 = vmatpush.msrb.mxu0 %v144_v38  ;;  %336 = vmatpush.msrb.mxu2 %v106_v39  ;;  %v80_v29 = vld [vmem:[%s2573_s0 + $0x210] sm:$0xff]  ;;  %v78_v39 = vld [vmem:[%s2573_s0 + $0x200] sm:$0xff] }
  0x26   :  { %485 = vmatpush.msrb.mxu1 %v45_v40  ;;  %386 = vmatpush.msrb.mxu3 %v138_v41  ;;  %v112_v38 = vld [vmem:[%s2573_s0 + $0x310] sm:$0xff]  ;;  %v21_v40 = vld [vmem:[%s2573_s0 + $0x38] sm:$0xff]  ;;  %v110_v41 = vld [vmem:[%s2573_s0 + $0x300] sm:$0xff] }
  0x27   :  { %337 = vmatpush.msrb.mxu2 %v104_v42  ;;  %450 = vmatpush.msrb.mxu0 %v142_v43  ;;  %v77_v42 = vld [vmem:[%s2573_s0 + $0x1f8] sm:$0xff] }
  0x28   :  { %387 = vmatpush.msrb.mxu3 %v136_v44  ;;  %486 = vmatpush.msrb.mxu1 %v43_v45  ;;  %v109_v43 = vld [vmem:[%s2573_s0 + $0x2f8] sm:$0xff]  ;;  %v19_v44 = vld [vmem:[%s2573_s0 + $0x28] sm:$0xff] }
  0x29   :  { %272 = vmatmul.f32.gmra.mxu2 %v1478_v46  ;;  %635 = vmatpush.msra.mxu0 %v141_v7  ;;  %v75_v45 = vld [vmem:[%s2573_s0 + $0x1e8] sm:$0xff]  ;;  %v1771_v7 = vld [vmem:[%s2574_s1 + $0x40] sm:$0xff] }
  0x2a   :  { %322 = vmatmul.f32.gmra.mxu3 %v1483_v47  ;;  %338 = vmatpush.msrb.mxu2 %v102_v48  ;;  %v135_v48 = vld [vmem:[%s2573_s0 + $0x3c8] sm:$0xff] }
  0x2b   :  { %388 = vmatpush.msrb.mxu3 %v134_v49  ;;  %254 = vmatmul.f32.gmra.mxu0 %v1494_v50  ;;  %v1709_v49 = vld [vmem:[%s2574_s1 + $0x10] sm:$0xff] }
  0x2c   :  { %487 = vmatpush.msrb.mxu1 %v41_v51  ;;  %339 = vmatpush.msrb.mxu2 %v100_v53  ;;  %v1714_v51 = vld [vmem:[%s2574_s1 + $0x18] sm:$0xff] }
  0x2d   :  { %304 = vmatmul.f32.gmra.mxu1 %v1504_v52  ;;  %389 = vmatpush.msrb.mxu3 %v132_v54  ;;  %v17_v53 = vld [vmem:[%s2573_s0 + $0x18] sm:$0xff]  ;;  %v107_v54 = vld [vmem:[%s2573_s0 + $0x2e8] sm:$0xff] }
  0x2e   :  { %488 = vmatpush.msrb.mxu1 %v39_v55  ;;  %340 = vmatpush.msrb.mxu2 %v98_v56  ;;  %v1725_v55 = vld [vmem:[%s2574_s1 + $0xc8] sm:$0xff]  ;;  %v73_v56 = vld [vmem:[%s2573_s0 + $0x1d8] sm:$0xff] }
  0x2f   :  { %390 = vmatpush.msrb.mxu3 %v130_v57  ;;  %636 = vmatpush.msra.mxu0 %v139_v22  ;;  %v1734_v57 = vld [vmem:[%s2574_s1 + $0xd0] sm:$0xff]  ;;  %v1813_v22 = vld [vmem:[%s2574_s1 + $0x60] sm:$0xff] }
  0x30   :  { %489 = vmatpush.msrb.mxu1 %v37_v58  ;;  %341 = vmatpush.msrb.mxu2 %v96_v59  ;;  %v105_v58 = vld [vmem:[%s2573_s0 + $0x2d8] sm:$0xff]  ;;  %v15_v59 = vld [vmem:[%s2573_s0 + $0x8] sm:$0xff] }
  0x31   :  { %275 = vmatmul.f32.gmra.mxu2 %v1532_v60  ;;  %391 = vmatpush.msrb.mxu3 %v128_v62  ;;  %v71_v62 = vld [vmem:[%s2573_s0 + $0x1c8] sm:$0xff] }
  0x32   :  { %325 = vmatmul.f32.gmra.mxu3 %v1537_v61  ;;  %342 = vmatpush.msrb.mxu2 %v94_v63  ;;  %v145_v63 = vld [vmem:[%s2573_s0 + $0x418] sm:$0xff] }
  0x33   :  { %257 = vmatmul.f32.gmra.mxu0 %v1548_v0  ;;  %490 = vmatpush.msrb.mxu1 %v35_v1  ;;  %v103_v1 = vld [vmem:[%s2573_s0 + $0x2c8] sm:$0xff] }
  0x34   :  { %343 = vmatpush.msrb.mxu2 %v92_v3  ;;  %392 = vmatpush.msrb.mxu3 %v126_v4  ;;  %v69_v3 = vld [vmem:[%s2573_s0 + $0x1b8] sm:$0xff] }
  0x35   :  { %307 = vmatmul.f32.gmra.mxu1 %v1558_v2  ;;  %637 = vmatpush.msra.mxu0 %v137_v26  ;;  %v133_v4 = vld [vmem:[%s2573_s0 + $0x3b8] sm:$0xff]  ;;  %v59_v26 = vld [vmem:[%s2573_s0 + $0x168] sm:$0xff] }
  0x36   :  { %491 = vmatpush.msrb.mxu1 %v33_v5  ;;  %344 = vmatpush.msrb.mxu2 %v90_v6  ;;  %v101_v5 = vld [vmem:[%s2573_s0 + $0x2b8] sm:$0xff] }
  0x37   :  { %393 = vmatpush.msrb.mxu3 %v124_v8  ;;  %638 = vmatpush.msra.mxu0 %v135_v48  ;;  %v1766_v6 = vld [vmem:[%s2574_s1 + $0x38] sm:$0xff]  ;;  %v67_v8 = vld [vmem:[%s2573_s0 + $0x1a8] sm:$0xff] }
  0x38   :  { %492 = vmatpush.msrb.mxu1 %v31_v9  ;;  %345 = vmatpush.msrb.mxu2 %v88_v10  ;;  %v99_v9 = vld [vmem:[%s2573_s0 + $0x2a8] sm:$0xff]  ;;  %v1782_v10 = vld [vmem:[%s2574_s1 + $0x20] sm:$0xff]  ;;  %v1896_v48 = vld [vmem:[%s2574_s1 + $0x98] sm:$0xff] }
  0x39   :  { %278 = vmatmul.f32.gmra.mxu2 %v1589_v11  ;;  %394 = vmatpush.msrb.mxu3 %v122_v13  ;;  %v65_v13 = vld [vmem:[%s2573_s0 + $0x198] sm:$0xff] }
  0x3a   :  { %328 = vmatmul.f32.gmra.mxu3 %v1594_v12  ;;  %346 = vmatpush.msrb.mxu2 %v86_v14  ;;  %v97_v14 = vld [vmem:[%s2573_s0 + $0x298] sm:$0xff] }
  0x3b   :  { %260 = vmatmul.f32.gmra.mxu0 %v1605_v15  ;;  %493 = vmatpush.msrb.mxu1 %v29_v16  ;;  %v131_v16 = vld [vmem:[%s2573_s0 + $0x3a8] sm:$0xff] }
  0x3c   :  { %395 = vmatpush.msrb.mxu3 %v120_v18  ;;  %347 = vmatpush.msrb.mxu2 %v84_v19  ;;  %v63_v18 = vld [vmem:[%s2573_s0 + $0x188] sm:$0xff] }
  0x3d   :  { %310 = vmatmul.f32.gmra.mxu1 %v1615_v17  ;;  %639 = vmatpush.msra.mxu0 %v133_v4  ;;  %v95_v19 = vld [vmem:[%s2573_s0 + $0x288] sm:$0xff]  ;;  %v49_v4 = vld [vmem:[%s2573_s0 + $0x118] sm:$0xff] }
  0x3e   :  { %494 = vmatpush.msrb.mxu1 %v27_v20  ;;  %396 = vmatpush.msrb.mxu3 %v118_v21  ;;  %v129_v20 = vld [vmem:[%s2573_s0 + $0x398] sm:$0xff] }
  0x3f   :  { %348 = vmatpush.msrb.mxu2 %v82_v23  ;;  %640 = vmatpush.msra.mxu0 %v131_v16  ;;  %v61_v21 = vld [vmem:[%s2573_s0 + $0x178] sm:$0xff]  ;;  %v79_v16 = vld [vmem:[%s2573_s0 + $0x208] sm:$0xff] }
  0x40   :  { %495 = vmatpush.msrb.mxu1 %v25_v24  ;;  %397 = vmatpush.msrb.mxu3 %v116_v25  ;;  %v93_v23 = vld [vmem:[%s2573_s0 + $0x278] sm:$0xff]  ;;  %v1826_v24 = vld [vmem:[%s2574_s1 + $0x48] sm:$0xff] }
  0x41   :  { %281 = vmatmul.f32.gmra.mxu2 %v1649_v27  ;;  %641 = vmatpush.msra.mxu0 %v129_v20  ;;  %v127_v25 = vld [vmem:[%s2573_s0 + $0x388] sm:$0xff]  ;;  %v113_v20 = vld [vmem:[%s2573_s0 + $0x318] sm:$0xff] }
  0x42   :  { %331 = vmatmul.f32.gmra.mxu3 %v1654_v28  ;;  %349 = vmatpush.msrb.mxu2 %v80_v29  ;;  %v91_v29 = vld [vmem:[%s2573_s0 + $0x268] sm:$0xff] }
  0x43   :  { %398 = vmatpush.msrb.mxu3 %v114_v30  ;;  %263 = vmatmul.f32.gmra.mxu0 %v1665_v31  ;;  %v125_v30 = vld [vmem:[%s2573_s0 + $0x378] sm:$0xff] }
  0x44   :  { %496 = vmatpush.msrb.mxu1 %v23_v34  ;;  %350 = vmatpush.msrb.mxu2 %v78_v39  ;;  %v57_v34 = vld [vmem:[%s2573_s0 + $0x158] sm:$0xff]  ;;  %v1861_v39 = vld [vmem:[%s2574_s1 + $0x70] sm:$0xff] }
  0x45   :  { %313 = vmatmul.f32.gmra.mxu1 %v1675_v37  ;;  %399 = vmatpush.msrb.mxu3 %v112_v38  ;;  %v1851_v38 = vld [vmem:[%s2574_s1 + $0x88] sm:$0xff] }
  0x46   :  { %497 = vmatpush.msrb.mxu1 %v21_v40  ;;  %535 = vmatpush.msra.mxu2 %v77_v42  ;;  %v143_v40 = vld [vmem:[%s2573_s0 + $0x408] sm:$0xff] }
  0x47   :  { %400 = vmatpush.msrb.mxu3 %v110_v41  ;;  %642 = vmatpush.msra.mxu0 %v127_v25  ;;  %v89_v41 = vld [vmem:[%s2573_s0 + $0x258] sm:$0xff]  ;;  %v123_v42 = vld [vmem:[%s2573_s0 + $0x368] sm:$0xff] }
  0x48   :  { %498 = vmatpush.msrb.mxu1 %v19_v44  ;;  %536 = vmatpush.msra.mxu2 %v75_v45  ;;  %v87_v44 = vld [vmem:[%s2573_s0 + $0x248] sm:$0xff]  ;;  %v1886_v45 = vld [vmem:[%s2574_s1 + $0xb0] sm:$0xff]  ;;  %v2013_v25 = vld [vmem:[%s2574_s1 + $0x158] sm:$0xff] }
  0x49   :  { %585 = vmatpush.msra.mxu3 %v109_v43  ;;  %351 = vmatmul.f32.vlgmr.msrb.gmra.mxu2 %v1709_v49  ;;  %v55_v43 = vld [vmem:[%s2573_s0 + $0x148] sm:$0xff] }
  0x4a   :  { %401 = vmatmul.f32.vlgmr.msrb.gmra.mxu3 %v1714_v51  ;;  %499 = vmatpush.msrb.mxu1 %v17_v53  ;;  %v121_v53 = vld [vmem:[%s2573_s0 + $0x358] sm:$0xff] }
  0x4b   :  { %586 = vmatpush.msra.mxu3 %v107_v54  ;;  %266 = vmatmul.f32.gmra.mxu0 %v1725_v55  ;;  %v53_v54 = vld [vmem:[%s2573_s0 + $0x138] sm:$0xff] }
  0x4c   :  { %537 = vmatpush.msra.mxu2 %v73_v56  ;;  %500 = vmatpush.msrb.mxu1 %v15_v59  ;;  %v85_v56 = vld [vmem:[%s2573_s0 + $0x238] sm:$0xff] }
  0x4d   :  { %316 = vmatmul.f32.gmra.mxu1 %v1734_v57  ;;  %587 = vmatpush.msra.mxu3 %v105_v58  ;;  %v119_v58 = vld [vmem:[%s2573_s0 + $0x348] sm:$0xff]  ;;  %v1918_v59 = vld [vmem:[%s2574_s1 + $0xd8] sm:$0xff] }
  0x4e   :  { %538 = vmatpush.msra.mxu2 %v71_v62  ;;  %699 = vmatpush.msra.mxu1 %v145_v63  ;;  %v1928_v62 = vld [vmem:[%s2574_s1 + $0xc0] sm:$0xff]  ;;  %v51_v63 = vld [vmem:[%s2573_s0 + $0x128] sm:$0xff] }
  0x4f   :  { %588 = vmatpush.msra.mxu3 %v103_v1  ;;  %643 = vmatpush.msra.mxu0 %v125_v30  ;;  %v83_v1 = vld [vmem:[%s2573_s0 + $0x228] sm:$0xff]  ;;  %v2038_v30 = vld [vmem:[%s2574_s1 + $0x160] sm:$0xff] }
  0x50   :  { %539 = vmatpush.msra.mxu2 %v69_v3  ;;  %700 = vmatpush.msra.mxu1 %v143_v40  ;;  %v117_v3 = vld [vmem:[%s2573_s0 + $0x338] sm:$0xff]  ;;  %v2058_v40 = vld [vmem:[%s2574_s1 + $0x188] sm:$0xff] }
  0x51   :  { %589 = vmatpush.msra.mxu3 %v101_v5  ;;  %354 = vmatmul.f32.gmra.mxu2 %v1766_v6  ;;  %v81_v5 = vld [vmem:[%s2573_s0 + $0x218] sm:$0xff] }
  0x52   :  { %404 = vmatmul.f32.gmra.mxu3 %v1771_v7  ;;  %540 = vmatpush.msra.mxu2 %v67_v8  ;;  %v1953_v8 = vld [vmem:[%s2574_s1 + $0x100] sm:$0xff] }
  0x53   :  { %590 = vmatpush.msra.mxu3 %v99_v9  ;;  %1224 = vmatmul.msk.f32.vlgmr.msrb.gmra.mxu0 %vm201_vm0, %v1782_v10  ;;  %v1963_v9 = vld [vmem:[%s2574_s1 + $0xe8] sm:$0xff] }
  0x54   :  { %541 = vmatpush.msra.mxu2 %v65_v13  ;;  %644 = vmatpush.msra.mxu0 %v123_v42  ;;  %v115_v13 = vld [vmem:[%s2573_s0 + $0x328] sm:$0xff] }
  0x55   :  { %501 = vmatmul.f32.vlgmr.msrb.gmra.mxu1 %v1437_v35  ;;  %591 = vmatpush.msra.mxu3 %v97_v14  ;;  %v1818_v35 = vld [vmem:[%s2574_s1 + $0x68] sm:$0xff] }
  0x56   :  { %542 = vmatpush.msra.mxu2 %v63_v18  ;;  %645 = vmatpush.msra.mxu0 %v121_v53  ;;  %v47_v14 = vld [vmem:[%s2573_s0 + $0x108] sm:$0xff] }
  0x57   :  { %592 = vmatpush.msra.mxu3 %v95_v19  ;;  %v1982_v18 = vld [vmem:[%s2574_s1 + $0x128] sm:$0xff]  ;;  %v1987_v19 = vld [vmem:[%s2574_s1 + $0x130] sm:$0xff] }
  0x58   :  { %543 = vmatpush.msra.mxu2 %v61_v21  ;;  %646 = vmatpush.msra.mxu0 %v119_v58  ;;  %v111_v21 = vld [vmem:[%s2573_s0 + $0x308] sm:$0xff] }
  0x59   :  { %357 = vmatmul.f32.gmra.mxu2 %v1813_v22  ;;  %593 = vmatpush.msra.mxu3 %v93_v23  ;;  %v2008_v23 = vld [vmem:[%s2574_s1 + $0x150] sm:$0xff] }
  0x5a   :  { %407 = vmatmul.f32.gmra.mxu3 %v1818_v35  ;;  %544 = vmatpush.msra.mxu2 %v59_v26  ;;  %v2028_v26 = vld [vmem:[%s2574_s1 + $0x178] sm:$0xff] }
  0x5b   :  { %1225 = vmatmul.msk.f32.gmra.mxu0 %vm201_vm0, %v1826_v24  ;;  %594 = vmatpush.msra.mxu3 %v91_v29  ;;  %v2033_v29 = vld [vmem:[%s2574_s1 + $0x180] sm:$0xff] }
  0x5c   :  { %545 = vmatpush.msra.mxu2 %v57_v34  ;;  %647 = vmatpush.msra.mxu0 %v117_v3  ;;  %v2053_v34 = vld [vmem:[%s2574_s1 + $0x1a8] sm:$0xff] }
  0x5d   :  { %504 = vmatmul.f32.gmra.mxu1 %v1494_v50  ;;  %v1856_v50 = vld [vmem:[%s2574_s1 + $0x90] sm:$0xff]  ;;  %595 = vmatpush.msra.mxu3 %v89_v41 }
  0x5e   :  { %546 = vmatpush.msra.mxu2 %v55_v43  ;;  %648 = vmatpush.msra.mxu0 %v115_v13  ;;  %v2068_v41 = vld [vmem:[%s2574_s1 + $0x1b0] sm:$0xff] }
  0x5f   :  { %596 = vmatpush.msra.mxu3 %v87_v44 }
  0x60   :  { %547 = vmatpush.msra.mxu2 %v53_v54  ;;  %649 = vmatpush.msra.mxu0 %v113_v20 }
  0x61   :  { %360 = vmatmul.f32.gmra.mxu2 %v1851_v38  ;;  %597 = vmatpush.msra.mxu3 %v85_v56 }
  0x62   :  { %410 = vmatmul.f32.gmra.mxu3 %v1856_v50  ;;  %548 = vmatpush.msra.mxu2 %v51_v63 }
  0x63   :  { %1226 = vmatmul.msk.f32.gmra.mxu0 %vm201_vm0, %v1861_v39  ;;  %598 = vmatpush.msra.mxu3 %v83_v1 }
  0x64   :  { %549 = vmatpush.msra.mxu2 %v49_v4  ;;  %650 = vmatpush.msra.mxu0 %v111_v21 }
  0x65   :  { %507 = vmatmul.f32.gmra.mxu1 %v1548_v0  ;;  %v1891_v0 = vld [vmem:[%s2574_s1 + $0xb8] sm:$0xff]  ;;  %599 = vmatpush.msra.mxu3 %v81_v5 }
  0x66   :  { %550 = vmatpush.msra.mxu2 %v47_v14 }
  0x67   :  { %600 = vmatpush.msra.mxu3 %v79_v16 }
  0x69   :  { %363 = vmatmul.f32.gmra.mxu2 %v1886_v45 }
  0x6a   :  { %413 = vmatmul.f32.gmra.mxu3 %v1891_v0 }
  0x6b   :  { %1227 = vmatmul.msk.f32.gmra.mxu0 %vm201_vm0, %v1896_v48 }
  0x6d   :  { %510 = vmatmul.f32.gmra.mxu1 %v1605_v15  ;;  %v1923_v15 = vld [vmem:[%s2574_s1 + $0xe0] sm:$0xff] }
  0x71   :  { %366 = vmatmul.f32.gmra.mxu2 %v1918_v59 }
  0x72   :  { %416 = vmatmul.f32.gmra.mxu3 %v1923_v15 }
  0x73   :  { %1228 = vmatmul.msk.f32.gmra.mxu0 %vm201_vm0, %v1928_v62 }
  0x75   :  { %513 = vmatmul.f32.gmra.mxu1 %v1665_v31  ;;  %v1958_v31 = vld [vmem:[%s2574_s1 + $0x108] sm:$0xff] }
  0x79   :  { %369 = vmatmul.f32.gmra.mxu2 %v1953_v8 }
  0x7a   :  { %419 = vmatmul.f32.gmra.mxu3 %v1958_v31 }
  0x7b   :  { %1229 = vmatmul.msk.f32.gmra.mxu0 %vm201_vm0, %v1963_v9 }
  0x7d   :  { %516 = vmatmul.f32.gmra.mxu1 %v1725_v55  ;;  %v1992_v55 = vld [vmem:[%s2574_s1 + $0x110] sm:$0xff] }
  0x81   :  { %372 = vmatmul.f32.gmra.mxu2 %v1982_v18 }
  0x82   :  { %422 = vmatmul.f32.gmra.mxu3 %v1987_v19 }
  0x83   :  { %1230 = vmatmul.msk.f32.gmra.mxu0 %vm201_vm0, %v1992_v55 }
  0x85   :  { %519 = vmatmul.f32.gmra.mxu1 %v1424_v32  ;;  %v2018_v32 = vld [vmem:[%s2574_s1 + $0x138] sm:$0xff] }
  0x89   :  { %375 = vmatmul.f32.gmra.mxu2 %v2008_v23 }
  0x8a   :  { %425 = vmatmul.f32.gmra.mxu3 %v2013_v25 }
  0x8b   :  { %1231 = vmatmul.msk.f32.gmra.mxu0 %vm201_vm0, %v2018_v32 }
  0x8d   :  { %522 = vmatmul.f32.gmra.mxu1 %v1478_v46  ;;  %v2048_v46 = vld [vmem:[%s2574_s1 + $0x1a0] sm:$0xff] }
  0x91   :  { %378 = vmatmul.f32.gmra.mxu2 %v2028_v26 }
  0x92   :  { %428 = vmatmul.f32.gmra.mxu3 %v2033_v29 }
  0x93   :  { %1232 = vmatmul.msk.f32.gmra.mxu0 %vm201_vm0, %v2038_v30 }
  0x95   :  { %525 = vmatmul.f32.gmra.mxu1 %v1532_v60 }
  0x99   :  { %381 = vmatmul.f32.gmra.mxu2 %v2048_v46 }
  0x9a   :  { %431 = vmatmul.f32.gmra.mxu3 %v2053_v34 }
  0x9b   :  { %1233 = vmatmul.msk.f32.gmra.mxu0 %vm201_vm0, %v2058_v40 }
  0x9d   :  { %528 = vmatmul.f32.gmra.mxu1 %v1589_v11 }
  0xa0   :  { %v252_v60 = vpop.f32.mrf.mxu0 }
  0xa1   :  { %v302_v42 = vpop.f32.mrf.mxu1  ;;  %551 = vmatmul.f32.vlgmr.msra.gmra.mxu2 %v1444_v36 }
  0xa2   :  { %601 = vmatmul.f32.vlgmr.msra.gmra.mxu3 %v1709_v49 }
  0xa3   :  { %1234 = vmatmul.msk.f32.gmra.mxu0 %vm201_vm0, %v2068_v41 }
  0xa4   :  { %v270_v43 = vpop.f32.mrf.mxu2 }
  0xa5   :  { %v320_v44 = vpop.f32.mrf.mxu3  ;;  %531 = vmatmul.f32.gmra.mxu1 %v1649_v27 }
  0xa6   :  { %v2075_v53 = vadd.f32 %v320_v44, %v270_v43 }
  0xa8   :  { %v255_v11 = vpop.f32.mrf.mxu0 }
  0xa9   :  { %554 = vmatmul.f32.gmra.mxu2 %v1504_v52 }
  0xaa   :  { %v305_v54 = vpop.f32.mrf.mxu1  ;;  %604 = vmatmul.f32.gmra.mxu3 %v1766_v6 }
  0xab   :  { %651 = vmatmul.f32.vlgmr.msra.gmra.mxu0 %v1714_v51 }
  0xac   :  { %v273_v36 = vpop.f32.mrf.mxu2 }
  0xad   :  { %v323_v56 = vpop.f32.mrf.mxu3  ;;  %1235 = vmatmul.msk.f32.vlgmr.msra.gmra.mxu1 %vm201_vm0, %v1782_v10 }
  0xae   :  { %v2082_v49 = vadd.f32 %v323_v56, %v273_v36  ;;  %v1023_v56 = vld [vmem:[%s2575_s2 + $0x60] sm:$0xff] }
  0xb0   :  { %v258_v58 = vpop.f32.mrf.mxu0 }
  0xb1   :  { %557 = vmatmul.f32.gmra.mxu2 %v1558_v2 }
  0xb2   :  { %v308_v63 = vpop.f32.mrf.mxu1  ;;  %607 = vmatmul.f32.gmra.mxu3 %v1813_v22 }
  0xb3   :  { %654 = vmatmul.f32.gmra.mxu0 %v1771_v7 }
  0xb4   :  { %v276_v52 = vpop.f32.mrf.mxu2 }
  0xb5   :  { %v326_v27 = vpop.f32.mrf.mxu3  ;;  %1236 = vmatmul.msk.f32.gmra.mxu1 %vm201_vm0, %v1826_v24 }
  0xb6   :  { %v2089_v51 = vadd.f32 %v326_v27, %v276_v52 }
  0xb8   :  { %v261_v6 = vpop.f32.mrf.mxu0 }
  0xb9   :  { %560 = vmatmul.f32.gmra.mxu2 %v1615_v17 }
  0xba   :  { %v311_v1 = vpop.f32.mrf.mxu1  ;;  %610 = vmatmul.f32.gmra.mxu3 %v1851_v38 }
  0xbb   :  { %657 = vmatmul.f32.gmra.mxu0 %v1818_v35 }
  0xbc   :  { %v279_v2 = vpop.f32.mrf.mxu2 }
  0xbd   :  { %v329_v10 = vpop.f32.mrf.mxu3  ;;  %1237 = vmatmul.msk.f32.gmra.mxu1 %vm201_vm0, %v1861_v39 }
  0xbe   :  { %v2096_v7 = vadd.f32 %v329_v10, %v279_v2 }
  0xc0   :  { %v264_v22 = vpop.f32.mrf.mxu0 }
  0xc1   :  { %563 = vmatmul.f32.gmra.mxu2 %v1675_v37 }
  0xc2   :  { %v314_v3 = vpop.f32.mrf.mxu1  ;;  %613 = vmatmul.f32.gmra.mxu3 %v1886_v45  ;;  %v303_v45 = vadd.f32 %v302_v42, %v252_v60 }
  0xc3   :  { %v2100_v24 = vadd.f32 %v314_v3, %v264_v22  ;;  %660 = vmatmul.f32.gmra.mxu0 %v1856_v50  ;;  %v1025_v22 = vld [vmem:[%s2575_s2 + $0x70] sm:$0xff] }
  0xc4   :  { %v282_v17 = vpop.f32.mrf.mxu2 }
  0xc5   :  { %v332_v38 = vpop.f32.mrf.mxu3  ;;  %1238 = vmatmul.msk.f32.gmra.mxu1 %vm201_vm0, %v1896_v48 }
  0xc6   :  { %v2105_v35 = vadd.f32 %v332_v38, %v282_v17 }
  0xc8   :  { %v267_v39 = vpop.f32.mrf.mxu0 }
  0xc9   :  { %566 = vmatmul.f32.gmra.mxu2 %v1734_v57 }
  0xca   :  { %v317_v4 = vpop.f32.mrf.mxu1  ;;  %616 = vmatmul.f32.gmra.mxu3 %v1918_v59  ;;  %v306_v59 = vadd.f32 %v305_v54, %v255_v11 }
  0xcb   :  { %v2109_v37 = vadd.f32 %v317_v4, %v267_v39  ;;  %663 = vmatmul.f32.gmra.mxu0 %v1891_v0 }
  0xcc   :  { %v352_v5 = vpop.f32.mrf.mxu2 }
  0xcd   :  { %1239 = vmatmul.msk.f32.gmra.mxu1 %vm201_vm0, %v1928_v62  ;;  %v402_v50 = vpop.f32.mrf.mxu3  ;;  %v353_v13 = vadd.f32 %v352_v5, %v303_v45 }
  0xcf   :  { %v403_v48 = vadd.f32 %v402_v50, %v353_v13 }
  0xd0   :  { %v452_v14 = vpop.f32.mrf.mxu0 }
  0xd1   :  { %v2114_v16 = vadd.f32 %v452_v14, %v403_v48  ;;  %569 = vmatmul.f32.gmra.mxu2 %v1429_v33 }
  0xd2   :  { %v2117_v57 = vpop.f32.mrf.mxu1  ;;  %619 = vmatmul.f32.gmra.mxu3 %v1953_v8  ;;  %v309_v8 = vadd.f32 %v308_v63, %v258_v58  ;;  %v1304_v58 = vmov 0  }
  0xd3   :  { %666 = vmatmul.f32.gmra.mxu0 %v1923_v15  ;;  %1280 = vset.pattern.permute.xlu0 %v1304_v58 }
  0xd4   :  { %v355_v0 = vpop.f32.mrf.mxu2  ;;  %1279 = vset.pattern.permute.xlu1 %v1304_v58  ;;  %1128 = vperm.xlu0 %1280, %v1023_v56  }
  0xd5   :  { %1240 = vmatmul.msk.f32.gmra.mxu1 %vm201_vm0, %v1963_v9  ;;  %v405_v62 = vpop.f32.mrf.mxu3  ;;  %v356_v20 = vadd.f32 %v355_v0, %v306_v59  ;;  %1281 = vset.pattern.permute.xlu2 %v1304_v58 }
  0xd7   :  { %v406_v21 = vadd.f32 %v405_v62, %v356_v20 }
  0xd8   :  { %v455_v60 = vpop.f32.mrf.mxu0 }
  0xd9   :  { %v2123_v42 = vadd.f32 %v455_v60, %v406_v21  ;;  %572 = vmatmul.f32.gmra.mxu2 %v1483_v47 }
  0xda   :  { %v2126_v33 = vpop.f32.mrf.mxu1  ;;  %622 = vmatmul.f32.gmra.mxu3 %v1982_v18  ;;  %v312_v18 = vadd.f32 %v311_v1, %v261_v6  ;;  %v1022_v6 = vld [vmem:[%s2575_s2 + $0x58] sm:$0xff] }
  0xdb   :  { %669 = vmatmul.f32.gmra.mxu0 %v1958_v31  ;;  %1123 = vperm.xlu1 %1279, %v1022_v6  }
  0xdc   :  { %v358_v15 = vpop.f32.mrf.mxu2 }
  0xdd   :  { %1241 = vmatmul.msk.f32.gmra.mxu1 %vm201_vm0, %v1992_v55  ;;  %v408_v9 = vpop.f32.mrf.mxu3  ;;  %v359_v43 = vadd.f32 %v358_v15, %v309_v8 }
  0xdf   :  { %v409_v44 = vadd.f32 %v408_v9, %v359_v43 }
  0xe0   :  { %v458_v11 = vpop.f32.mrf.mxu0 }
  0xe1   :  { %v2132_v54 = vadd.f32 %v458_v11, %v409_v44  ;;  %575 = vmatmul.f32.gmra.mxu2 %v1537_v61 }
  0xe2   :  { %v2135_v47 = vpop.f32.mrf.mxu1  ;;  %625 = vmatmul.f32.gmra.mxu3 %v2008_v23 }
  0xe3   :  { %672 = vmatmul.f32.gmra.mxu0 %v1987_v19  ;;  %1138 = vperm.xlu1 %1279, %v1025_v22  }
  0xe4   :  { %v361_v31 = vpop.f32.mrf.mxu2 }
  0xe5   :  { %1242 = vmatmul.msk.f32.gmra.mxu1 %vm201_vm0, %v2018_v32  ;;  %v411_v55 = vpop.f32.mrf.mxu3  ;;  %v362_v36 = vadd.f32 %v361_v31, %v312_v18 }
  0xe7   :  { %v412_v61 = vadd.f32 %v411_v55, %v362_v36 }
  0xe8   :  { %v461_v23 = vpop.f32.mrf.mxu0 }
  0xe9   :  { %v2144_v63 = vadd.f32 %v461_v23, %v412_v61  ;;  %578 = vmatmul.f32.gmra.mxu2 %v1594_v12 }
  0xea   :  { %v2147_v19 = vpop.f32.mrf.mxu1  ;;  %628 = vmatmul.f32.gmra.mxu3 %v2028_v26 }
  0xeb   :  { %675 = vmatmul.f32.gmra.mxu0 %v2013_v25 }
  0xec   :  { %v364_v32 = vpop.f32.mrf.mxu2 }
  0xed   :  { %1243 = vmatmul.msk.f32.gmra.mxu1 %vm201_vm0, %v2038_v30  ;;  %v414_v52 = vpop.f32.mrf.mxu3  ;;  %v365_v27 = vadd.f32 %v364_v32, %v2100_v24 }
  0xef   :  { %v415_v1 = vadd.f32 %v414_v52, %v365_v27 }
  0xf0   :  { %v464_v12 = vpop.f32.mrf.mxu0 }
  0xf1   :  { %v2157_v2 = vadd.f32 %v464_v12, %v415_v1  ;;  %581 = vmatmul.f32.gmra.mxu2 %v1654_v28 }
  0xf2   :  { %v2160_v26 = vpop.f32.mrf.mxu1  ;;  %631 = vmatmul.f32.gmra.mxu3 %v2048_v46 }
  0xf3   :  { %678 = vmatmul.f32.gmra.mxu0 %v2033_v29 }
  0xf4   :  { %v367_v25 = vpop.f32.mrf.mxu2 }
  0xf5   :  { %1244 = vmatmul.msk.f32.gmra.mxu1 %vm201_vm0, %v2058_v40  ;;  %v417_v30 = vpop.f32.mrf.mxu3  ;;  %v368_v10 = vadd.f32 %v367_v25, %v2109_v37 }
  0xf7   :  { %v418_v3 = vadd.f32 %v417_v30, %v368_v10 }
  0xf8   :  { %v467_v28 = vpop.f32.mrf.mxu0 }
  0xf9   :  { %v2170_v24 = vadd.f32 %v467_v28, %v418_v3 }
  0xfa   :  { %v2172_v17 = vpop.f32.mrf.mxu1 }
  0xfb   :  { %681 = vmatmul.f32.gmra.mxu0 %v2053_v34  ;;  %v1024_v34 = vld [vmem:[%s2575_s2 + $0x68] sm:$0xff] }
  0xfc   :  { %v370_v29 = vpop.f32.mrf.mxu2  ;;  %1133 = vperm.xlu2 %1281, %v1024_v34  }
  0xfd   :  { %1245 = vmatmul.msk.f32.gmra.mxu1 %vm201_vm0, %v2068_v41  ;;  %v420_v46 = vpop.f32.mrf.mxu3  ;;  %v371_v40 = vadd.f32 %v370_v29, %v2075_v53 }
  0xff   :  { %v421_v38 = vadd.f32 %v420_v46, %v371_v40 }
 0x100   :  { %v470_v39 = vpop.f32.mrf.mxu0 }
 0x101   :  { %v2178_v4 = vadd.f32 %v470_v39, %v421_v38 }
 0x102   :  { %v2180_v37 = vpop.f32.mrf.mxu1 }
 0x104   :  { %v373_v45 = vpop.f32.mrf.mxu2 }
 0x105   :  { %v423_v5 = vpop.f32.mrf.mxu3  ;;  %v374_v50 = vadd.f32 %v373_v45, %v2082_v49 }
 0x107   :  { %v424_v13 = vadd.f32 %v423_v5, %v374_v50 }
 0x108   :  { %v473_v48 = vpop.f32.mrf.mxu0 }
 0x109   :  { %v2186_v41 = vadd.f32 %v473_v48, %v424_v13 }
 0x10a   :  { %v2188_v53 = vpop.f32.mrf.mxu1 }
 0x10c   :  { %v376_v14 = vpop.f32.mrf.mxu2 }
 0x10d   :  { %v426_v59 = vpop.f32.mrf.mxu3  ;;  %v377_v0 = vadd.f32 %v376_v14, %v2089_v51 }
 0x10f   :  { %v427_v62 = vadd.f32 %v426_v59, %v377_v0 }
 0x110   :  { %v476_v20 = vpop.f32.mrf.mxu0 }
 0x111   :  { %v2191_v21 = vadd.f32 %v476_v20, %v427_v62 }
 0x112   :  { %v2193_v49 = vpop.f32.mrf.mxu1 }
 0x114   :  { %v379_v60 = vpop.f32.mrf.mxu2 }
 0x115   :  { %v429_v8 = vpop.f32.mrf.mxu3  ;;  %v380_v15 = vadd.f32 %v379_v60, %v2096_v7 }
 0x117   :  { %v430_v9 = vadd.f32 %v429_v8, %v380_v15 }
 0x118   :  { %v479_v43 = vpop.f32.mrf.mxu0 }
 0x119   :  { %v2196_v44 = vadd.f32 %v479_v43, %v430_v9 }
 0x11a   :  { %v2198_v11 = vpop.f32.mrf.mxu1 }
 0x11c   :  { %v382_v18 = vpop.f32.mrf.mxu2 }
 0x11d   :  { %v432_v31 = vpop.f32.mrf.mxu3  ;;  %v383_v51 = vadd.f32 %v382_v18, %v2105_v35 }
 0x11f   :  { %v433_v55 = vadd.f32 %v432_v31, %v383_v51 }
 0x120   :  { %v482_v36 = vpop.f32.mrf.mxu0 }
 0x121   :  { %v2201_v56 = vadd.f32 %v482_v36, %v433_v55 }
 0x122   :  { %v2203_v58 = vpop.f32.mrf.mxu1 }
 0x124   :  { %v552_v61 = vpop.f32.mrf.mxu2 }
 0x125   :  { %v602_v23 = vpop.f32.mrf.mxu3  ;;  %v553_v7 = vadd.f32 %v552_v61, %v2117_v57 }
 0x127   :  { %v603_v32 = vadd.f32 %v602_v23, %v553_v7 }
 0x128   :  { %v652_v52 = vpop.f32.mrf.mxu0 }
 0x129   :  { %v653_v27 = vadd.f32 %v652_v52, %v603_v32 }
 0x12a   :  { %v702_v6 = vpop.f32.mrf.mxu1 }
 0x12b   :  { %v2206_v1 = vadd.f32 %v702_v6, %v653_v27 }
 0x12c   :  { %v555_v12 = vpop.f32.mrf.mxu2 }
 0x12d   :  { %v605_v25 = vpop.f32.mrf.mxu3  ;;  %v556_v35 = vadd.f32 %v555_v12, %v2126_v33  ;;  %v736_v30 = vsel %vm735_vm1, %v2206_v1, 0.0 }
 0x12e   :  { %v737_v10 = vadd.f32 %v736_v30, %v2114_v16 }
 0x12f   :  { %v606_v22 = vadd.f32 %v605_v25, %v556_v35 }
 0x130   :  { %v655_v3 = vpop.f32.mrf.mxu0  ;;  %738 = vadd.xlane.f32.xlu0 %v737_v10 }
 0x131   :  { %v656_v57 = vadd.f32 %v655_v3, %v606_v22 }
 0x132   :  { %v705_v28 = vpop.f32.mrf.mxu1 }
 0x133   :  { %v2212_v29 = vadd.f32 %v705_v28, %v656_v57 }
 0x134   :  { %v558_v46 = vpop.f32.mrf.mxu2 }
 0x135   :  { %v608_v40 = vpop.f32.mrf.mxu3  ;;  %v559_v38 = vadd.f32 %v558_v46, %v2135_v47  ;;  %v740_v39 = vsel %vm735_vm1, %v2212_v29, 0.0 }
 0x136   :  { %v741_v33 = vadd.f32 %v740_v39, %v2123_v42 }
 0x137   :  { %v609_v45 = vadd.f32 %v608_v40, %v559_v38 }
 0x138   :  { %v658_v5 = vpop.f32.mrf.mxu0  ;;  %742 = vadd.xlane.f32.xlu0 %v741_v33 }
 0x139   :  { %v659_v50 = vadd.f32 %v658_v5, %v609_v45 }
 0x13a   :  { %v708_v13 = vpop.f32.mrf.mxu1 }
 0x13b   :  { %v2218_v34 = vadd.f32 %v708_v13, %v659_v50 }
 0x13c   :  { %v561_v48 = vpop.f32.mrf.mxu2 }
 0x13d   :  { %v611_v14 = vpop.f32.mrf.mxu3  ;;  %v562_v59 = vadd.f32 %v561_v48, %v2147_v19  ;;  %v744_v0 = vsel %vm735_vm1, %v2218_v34, 0.0 }
 0x13e   :  { %v745_v47 = vadd.f32 %v744_v0, %v2132_v54 }
 0x13f   :  { %v612_v62 = vadd.f32 %v611_v14, %v562_v59 }
 0x140   :  { %v661_v20 = vpop.f32.mrf.mxu0  ;;  %746 = vadd.xlane.f32.xlu1 %v745_v47 }
 0x141   :  { %v662_v60 = vadd.f32 %v661_v20, %v612_v62 }
 0x142   :  { %v711_v8 = vpop.f32.mrf.mxu1 }
 0x143   :  { %v2224_v15 = vadd.f32 %v711_v8, %v662_v60 }
 0x144   :  { %v564_v9 = vpop.f32.mrf.mxu2 }
 0x145   :  { %v614_v43 = vpop.f32.mrf.mxu3  ;;  %v565_v18 = vadd.f32 %v564_v9, %v2160_v26  ;;  %v748_v31 = vsel %vm735_vm1, %v2224_v15, 0.0 }
 0x146   :  { %v749_v19 = vadd.f32 %v748_v31, %v2144_v63 }
 0x147   :  { %v615_v51 = vadd.f32 %v614_v43, %v565_v18 }
 0x148   :  { %v664_v55 = vpop.f32.mrf.mxu0  ;;  %750 = vadd.xlane.f32.xlu1 %v749_v19 }
 0x149   :  { %v665_v36 = vadd.f32 %v664_v55, %v615_v51 }
 0x14a   :  { %v714_v61 = vpop.f32.mrf.mxu1 }
 0x14b   :  { %v2230_v23 = vadd.f32 %v714_v61, %v665_v36 }
 0x14c   :  { %v567_v7 = vpop.f32.mrf.mxu2 }
 0x14d   :  { %v617_v32 = vpop.f32.mrf.mxu3  ;;  %v568_v52 = vadd.f32 %v567_v7, %v2172_v17  ;;  %v752_v27 = vsel %vm735_vm1, %v2230_v23, 0.0 }
 0x14e   :  { %v753_v26 = vadd.f32 %v752_v27, %v2157_v2 }
 0x14f   :  { %v618_v6 = vadd.f32 %v617_v32, %v568_v52 }
 0x150   :  { %v667_v12 = vpop.f32.mrf.mxu0  ;;  %754 = vadd.xlane.f32.xlu2 %v753_v26 }
 0x151   :  { %v668_v25 = vadd.f32 %v667_v12, %v618_v6 }
 0x152   :  { %v717_v35 = vpop.f32.mrf.mxu1 }
 0x153   :  { %v2236_v30 = vadd.f32 %v717_v35, %v668_v25 }
 0x154   :  { %v570_v10 = vpop.f32.mrf.mxu2 }
 0x155   :  { %v620_v22 = vpop.f32.mrf.mxu3  ;;  %v571_v3 = vadd.f32 %v570_v10, %v2180_v37  ;;  %v756_v57 = vsel %vm735_vm1, %v2236_v30, 0.0 }
 0x156   :  { %v757_v17 = vadd.f32 %v756_v57, %v2170_v24 }
 0x157   :  { %v621_v28 = vadd.f32 %v620_v22, %v571_v3 }
 0x158   :  { %v670_v46 = vpop.f32.mrf.mxu0  ;;  %758 = vadd.xlane.f32.xlu2 %v757_v17 }
 0x159   :  { %v671_v40 = vadd.f32 %v670_v46, %v621_v28  ;;  %v1026_v46 = vld [vmem:[%s2575_s2 + $0x78] sm:$0xff] }
 0x15a   :  { %v720_v38 = vpop.f32.mrf.mxu1 }
 0x15b   :  { %v2242_v39 = vadd.f32 %v720_v38, %v671_v40  ;;  %v1028_v40 = vld [vmem:[%s2575_s2 + $0x88] sm:$0xff]  ;;  %v2280_v38 = vpop.permute.xlu0 %1128 }
 0x15c   :  { %v573_v33 = vpop.f32.mrf.mxu2 }
 0x15d   :  { %v623_v45 = vpop.f32.mrf.mxu3  ;;  %v574_v5 = vadd.f32 %v573_v33, %v2188_v53  ;;  %v760_v50 = vsel %vm735_vm1, %v2242_v39, 0.0  ;;  %v2282_v33 = vpop.permute.xlu1 %1123 }
 0x15e   :  { %v761_v37 = vadd.f32 %v760_v50, %v2178_v4 }
 0x15f   :  { %v624_v13 = vadd.f32 %v623_v45, %v574_v5 }
 0x160   :  { %v673_v48 = vpop.f32.mrf.mxu0  ;;  %762 = vadd.xlane.f32.xlu0 %v761_v37 }
 0x161   :  { %v674_v14 = vadd.f32 %v673_v48, %v624_v13 }
 0x162   :  { %v723_v59 = vpop.f32.mrf.mxu1 }
 0x163   :  { %v2248_v0 = vadd.f32 %v723_v59, %v674_v14 }
 0x164   :  { %v576_v47 = vpop.f32.mrf.mxu2 }
 0x165   :  { %v626_v62 = vpop.f32.mrf.mxu3  ;;  %v577_v20 = vadd.f32 %v576_v47, %v2193_v49  ;;  %v764_v60 = vsel %vm735_vm1, %v2248_v0, 0.0  ;;  %v2292_v48 = vpop.permute.xlu1 %1138 }
 0x166   :  { %v765_v53 = vadd.f32 %v764_v60, %v2186_v41 }
 0x167   :  { %v627_v8 = vadd.f32 %v626_v62, %v577_v20 }
 0x168   :  { %v676_v9 = vpop.f32.mrf.mxu0  ;;  %766 = vadd.xlane.f32.xlu1 %v765_v53 }
 0x169   :  { %v677_v43 = vadd.f32 %v676_v9, %v627_v8 }
 0x16a   :  { %v726_v18 = vpop.f32.mrf.mxu1 }
 0x16b   :  { %v2254_v31 = vadd.f32 %v726_v18, %v677_v43 }
 0x16c   :  { %v579_v19 = vpop.f32.mrf.mxu2 }
 0x16d   :  { %v629_v51 = vpop.f32.mrf.mxu3  ;;  %v580_v55 = vadd.f32 %v579_v19, %v2198_v11  ;;  %v768_v36 = vsel %vm735_vm1, %v2254_v31, 0.0 }
 0x16e   :  { %v769_v49 = vadd.f32 %v768_v36, %v2191_v21 }
 0x16f   :  { %v630_v61 = vadd.f32 %v629_v51, %v580_v55  ;;  %v2316_v51 = vpop.permute.xlu2 %1133 }
 0x170   :  { %v679_v7 = vpop.f32.mrf.mxu0  ;;  %770 = vadd.xlane.f32.xlu2 %v769_v49 }
 0x171   :  { %v680_v32 = vadd.f32 %v679_v7, %v630_v61 }
 0x172   :  { %v729_v52 = vpop.f32.mrf.mxu1 }
 0x173   :  { %v2260_v27 = vadd.f32 %v729_v52, %v680_v32 }
 0x174   :  { %v582_v26 = vpop.f32.mrf.mxu2 }
 0x175   :  { %v632_v6 = vpop.f32.mrf.mxu3  ;;  %v583_v12 = vadd.f32 %v582_v26, %v2203_v58  ;;  %v772_v25 = vsel %vm735_vm1, %v2260_v27, 0.0  ;;  %v1027_v58 = vld [vmem:[%s2575_s2 + $0x80] sm:$0xff] }
 0x176   :  { %v773_v11 = vadd.f32 %v772_v25, %v2196_v44 }
 0x177   :  { %v633_v35 = vadd.f32 %v632_v6, %v583_v12 }
 0x178   :  { %v682_v10 = vpop.f32.mrf.mxu0  ;;  %774 = vadd.xlane.f32.xlu0 %v773_v11 }
 0x179   :  { %v683_v22 = vadd.f32 %v682_v10, %v633_v35 }
 0x17a   :  { %v732_v3 = vpop.f32.mrf.mxu1 }
 0x17b   :  { %v2266_v57 = vadd.f32 %v732_v3, %v683_v22 }
 0x17d   :  { %v776_v17 = vsel %vm735_vm1, %v2266_v57, 0.0 }
 0x17e   :  { %v777_v28 = vadd.f32 %v776_v17, %v2201_v56 }
 0x180   :  { %778 = vadd.xlane.f32.xlu1 %v777_v28 }
 0x188   :  { %1148 = vperm.xlu2 %1281, %v1027_v58  }
 0x18c   :  { %1143 = vperm.xlu0 %1280, %v1026_v46  }
 0x199   :  { %1153 = vperm.xlu1 %1279, %v1028_v40  }
 0x1a3   :  { %v739_v45 = vpop.xlane.xlu0 %738 }
 0x1a4   :  { %v780_v5 = vmul.f32 0.0051020407, %v739_v45 }
 0x1a6   :  { %v2285_v50 = vsub.f32 %v2206_v1, %v780_v5  ;;  %v2288_v37 = vsub.f32 %v2114_v16, %v780_v5 }
 0x1a8   :  { %v814_v13 = vmul.f32 %v2285_v50, %v2285_v50  ;;  %v813_v59 = vmul.f32 %v2288_v37, %v2288_v37 }
 0x1aa   :  { %v835_v62 = vsel %vm735_vm1, %v814_v13, 0.0 }
 0x1ab   :  { %v743_v14 = vpop.xlane.xlu0 %742  ;;  %v836_v16 = vadd.f32 %v835_v62, %v813_v59 }
 0x1ac   :  { %v781_v47 = vmul.f32 0.0051020407, %v743_v14 }
 0x1ae   :  { %v2298_v20 = vsub.f32 %v2123_v42, %v781_v47  ;;  %v2301_v1 = vsub.f32 %v2212_v29, %v781_v47 }
 0x1b0   :  { %v815_v60 = vmul.f32 %v2298_v20, %v2298_v20  ;;  %v816_v53 = vmul.f32 %v2301_v1, %v2301_v1 }
 0x1b1   :  { %837 = vadd.xlane.f32.xlu2 %v836_v16 }
 0x1b2   :  { %v839_v8 = vsel %vm735_vm1, %v816_v53, 0.0 }
 0x1b3   :  { %v747_v9 = vpop.xlane.xlu1 %746  ;;  %v840_v43 = vadd.f32 %v839_v8, %v815_v60 }
 0x1b4   :  { %v782_v18 = vmul.f32 0.0051020407, %v747_v9 }
 0x1b6   :  { %v2309_v19 = vsub.f32 %v2218_v34, %v782_v18  ;;  %841 = vadd.xlane.f32.xlu0 %v840_v43  ;;  %v2312_v42 = vsub.f32 %v2132_v54, %v782_v18 }
 0x1b8   :  { %v818_v29 = vmul.f32 %v2309_v19, %v2309_v19  ;;  %v817_v49 = vmul.f32 %v2312_v42, %v2312_v42 }
 0x1ba   :  { %v843_v7 = vsel %vm735_vm1, %v818_v29, 0.0 }
 0x1bb   :  { %v751_v55 = vpop.xlane.xlu1 %750  ;;  %v844_v52 = vadd.f32 %v843_v7, %v817_v49 }
 0x1bc   :  { %v783_v36 = vmul.f32 0.0051020407, %v751_v55 }
 0x1be   :  { %v2321_v61 = vsub.f32 %v2144_v63, %v783_v36  ;;  %v2324_v34 = vsub.f32 %v2224_v15, %v783_v36 }
 0x1c0   :  { %v819_v54 = vmul.f32 %v2321_v61, %v2321_v61  ;;  %v820_v32 = vmul.f32 %v2324_v34, %v2324_v34 }
 0x1c2   :  { %v847_v26 = vsel %vm735_vm1, %v820_v32, 0.0 }
 0x1c3   :  { %v755_v6 = vpop.xlane.xlu2 %754  ;;  %845 = vadd.xlane.f32.xlu1 %v844_v52  ;;  %v848_v12 = vadd.f32 %v847_v26, %v819_v54 }
 0x1c4   :  { %v784_v25 = vmul.f32 0.0051020407, %v755_v6 }
 0x1c5   :  { %849 = vadd.xlane.f32.xlu2 %v848_v12 }
 0x1c6   :  { %v2333_v63 = vsub.f32 %v2157_v2, %v784_v25  ;;  %v2336_v15 = vsub.f32 %v2230_v23, %v784_v25 }
 0x1c8   :  { %v821_v11 = vmul.f32 %v2333_v63, %v2333_v63  ;;  %v822_v35 = vmul.f32 %v2336_v15, %v2336_v15 }
 0x1ca   :  { %v851_v10 = vsel %vm735_vm1, %v822_v35, 0.0 }
 0x1cb   :  { %v759_v22 = vpop.xlane.xlu2 %758  ;;  %v852_v3 = vadd.f32 %v851_v10, %v821_v11 }
 0x1cc   :  { %v785_v17 = vmul.f32 0.0051020407, %v759_v22 }
 0x1cd   :  { %853 = vadd.xlane.f32.xlu0 %v852_v3  ;;  %v1029_v3 = vld [vmem:[%s2575_s2 + $0x90] sm:$0xff] }
 0x1ce   :  { %v2344_v28 = vsub.f32 %v2170_v24, %v785_v17  ;;  %v2347_v2 = vsub.f32 %v2236_v30, %v785_v17 }
 0x1d0   :  { %v823_v23 = vmul.f32 %v2344_v28, %v2344_v28  ;;  %v824_v58 = vmul.f32 %v2347_v2, %v2347_v2 }
 0x1d2   :  { %v855_v46 = vsel %vm735_vm1, %v824_v58, 0.0 }
 0x1d3   :  { %v763_v40 = vpop.xlane.xlu0 %762  ;;  %v856_v45 = vadd.f32 %v855_v46, %v823_v23 }
 0x1d4   :  { %v786_v5 = vmul.f32 0.0051020407, %v763_v40 }
 0x1d5   :  { %857 = vadd.xlane.f32.xlu1 %v856_v45 }
 0x1d6   :  { %v2355_v13 = vsub.f32 %v2178_v4, %v786_v5  ;;  %v2358_v24 = vsub.f32 %v2242_v39, %v786_v5 }
 0x1d8   :  { %v825_v30 = vmul.f32 %v2355_v13, %v2355_v13  ;;  %v826_v14 = vmul.f32 %v2358_v24, %v2358_v24 }
 0x1da   :  { %v859_v59 = vsel %vm735_vm1, %v826_v14, 0.0 }
 0x1db   :  { %v767_v47 = vpop.xlane.xlu1 %766  ;;  %v860_v62 = vadd.f32 %v859_v59, %v825_v30 }
 0x1dc   :  { %v787_v16 = vmul.f32 0.0051020407, %v767_v47 }
 0x1dd   :  { %861 = vadd.xlane.f32.xlu2 %v860_v62 }
 0x1de   :  { %v2366_v60 = vsub.f32 %v2186_v41, %v787_v16  ;;  %v2369_v4 = vsub.f32 %v2248_v0, %v787_v16 }
 0x1e0   :  { %v827_v39 = vmul.f32 %v2366_v60, %v2366_v60  ;;  %v828_v53 = vmul.f32 %v2369_v4, %v2369_v4 }
 0x1e2   :  { %v863_v8 = vsel %vm735_vm1, %v828_v53, 0.0 }
 0x1e3   :  { %v771_v9 = vpop.xlane.xlu2 %770  ;;  %v864_v43 = vadd.f32 %v863_v8, %v827_v39 }
 0x1e4   :  { %v788_v18 = vmul.f32 0.0051020407, %v771_v9 }
 0x1e5   :  { %865 = vadd.xlane.f32.xlu0 %v864_v43 }
 0x1e6   :  { %v2377_v29 = vsub.f32 %v2191_v21, %v788_v18  ;;  %v2380_v41 = vsub.f32 %v2254_v31, %v788_v18 }
 0x1e8   :  { %v829_v0 = vmul.f32 %v2377_v29, %v2377_v29  ;;  %v830_v55 = vmul.f32 %v2380_v41, %v2380_v41 }
 0x1ea   :  { %v867_v36 = vsel %vm735_vm1, %v830_v55, 0.0 }
 0x1eb   :  { %v775_v49 = vpop.xlane.xlu0 %774  ;;  %v868_v7 = vadd.f32 %v867_v36, %v829_v0 }
 0x1ec   :  { %v789_v54 = vmul.f32 0.0051020407, %v775_v49  ;;  %v1011_v49 = vld [vmem:[%s2575_s2] sm:$0xff] }
 0x1ed   :  { %869 = vadd.xlane.f32.xlu1 %v868_v7 }
 0x1ee   :  { %v2388_v32 = vsub.f32 %v2196_v44, %v789_v54  ;;  %v2391_v21 = vsub.f32 %v2260_v27, %v789_v54 }
 0x1f0   :  { %v831_v31 = vmul.f32 %v2388_v32, %v2388_v32  ;;  %v832_v52 = vmul.f32 %v2391_v21, %v2391_v21 }
 0x1f2   :  { %v871_v26 = vsel %vm735_vm1, %v832_v52, 0.0 }
 0x1f3   :  { %v779_v6 = vpop.xlane.xlu1 %778  ;;  %v872_v12 = vadd.f32 %v871_v26, %v831_v31 }
 0x1f4   :  { %v790_v25 = vmul.f32 0.0051020407, %v779_v6  ;;  %v1012_v6 = vld [vmem:[%s2575_s2 + $0x8] sm:$0xff] }
 0x1f5   :  { %873 = vadd.xlane.f32.xlu2 %v872_v12 }
 0x1f6   :  { %v2399_v11 = vsub.f32 %v2201_v56, %v790_v25  ;;  %v2402_v44 = vsub.f32 %v2266_v57, %v790_v25  ;;  %v2412_v56 = vpop.permute.xlu2 %1148 }
 0x1f8   :  { %v833_v27 = vmul.f32 %v2399_v11, %v2399_v11  ;;  %v834_v35 = vmul.f32 %v2402_v44, %v2402_v44 }
 0x1fa   :  { %v875_v10 = vsel %vm735_vm1, %v834_v35, 0.0 }
 0x1fb   :  { %v876_v22 = vadd.f32 %v875_v10, %v833_v27 }
 0x1fd   :  { %877 = vadd.xlane.f32.xlu0 %v876_v22 }
 0x1fe   :  { %v2414_v17 = vpop.permute.xlu0 %1143 }
 0x20b   :  { %v2416_v5 = vpop.permute.xlu1 %1153 }
 0x211   :  { %1158 = vperm.xlu0 %1280, %v1029_v3  }
 0x224   :  { %v838_v57 = vpop.xlane.xlu2 %837 }
 0x225   :  { %v879_v23 = vmul.f32 0.0051020407, %v838_v57 }
 0x227   :  { %v890_v58 = vadd.f32 1e-05, %v879_v23 }
 0x229   :  { %1282 = vrsqrt.f32 %v890_v58  ;;  %v842_v46 = vpop.xlane.xlu0 %841  ;;  %vm907_vm3 = vweird.f32 %v890_v58 }
 0x22a   :  { %v880_v40 = vmul.f32 0.0051020407, %v842_v46 }
 0x22c   :  { %v891_v45 = vadd.f32 1e-05, %v880_v40 }
 0x22e   :  { %1284 = vrsqrt.f32 %v891_v45  ;;  %vm917_vm6 = vweird.f32 %v891_v45 }
 0x22f   :  { %v1283_v30 = vpop.eup %1282 }
 0x230   :  { %v902_v14 = vmul.f32 %v1283_v30, %v890_v58  ;;  %vm908_vm2 = vweird.f32 %v1283_v30 }
 0x231   :  { %vm909_vm4 = vmor %vm907_vm3, %vm908_vm2 }
 0x232   :  { %v903_v59 = vmul.f32 %v1283_v30, %v902_v14 }
 0x234   :  { %v1285_v47 = vpop.eup %1284  ;;  %v904_v62 = vmul.f32 0.5, %v903_v59 }
 0x235   :  { %v912_v16 = vmul.f32 %v1285_v47, %v891_v45  ;;  %vm918_vm5 = vweird.f32 %v1285_v47 }
 0x236   :  { %v905_v39 = vsub.f32 1.5, %v904_v62  ;;  %v846_v53 = vpop.xlane.xlu1 %845  ;;  %vm919_vm7 = vmor %vm917_vm6, %vm918_vm5 }
 0x237   :  { %v913_v8 = vmul.f32 %v1285_v47, %v912_v16  ;;  %v881_v9 = vmul.f32 0.0051020407, %v846_v53  ;;  %v1013_v16 = vld [vmem:[%s2575_s2 + $0x10] sm:$0xff] }
 0x238   :  { %v850_v43 = vpop.xlane.xlu2 %849  ;;  %v906_v18 = vmul.f32 %v1283_v30, %v905_v39 }
 0x239   :  { %v914_v0 = vmul.f32 0.5, %v913_v8  ;;  %v892_v55 = vadd.f32 1e-05, %v881_v9  ;;  %v882_v36 = vmul.f32 0.0051020407, %v850_v43 }
 0x23a   :  { %v910_v7 = vsel %vm909_vm4, %v1283_v30, %v906_v18  ;;  %v1014_v18 = vld [vmem:[%s2575_s2 + $0x18] sm:$0xff] }
 0x23b   :  { %v915_v54 = vsub.f32 1.5, %v914_v0  ;;  %1286 = vrsqrt.f32 %v892_v55  ;;  %v893_v31 = vadd.f32 1e-05, %v882_v36  ;;  %v1033_v52 = vmul.f32 %v1011_v49, %v910_v7 }
 0x23c   :  { %vm927_vm9 = vweird.f32 %v892_v55 }
 0x23d   :  { %1288 = vrsqrt.f32 %v893_v31  ;;  %v916_v26 = vmul.f32 %v1285_v47, %v915_v54  ;;  %1046 = vperm.xlu1 %1279, %v1033_v52   ;;  %vm937_vm12 = vweird.f32 %v893_v31 }
 0x23f   :  { %v920_v12 = vsel %vm919_vm7, %v1285_v47, %v916_v26 }
 0x240   :  { %v854_v25 = vpop.xlane.xlu0 %853  ;;  %v1034_v27 = vmul.f32 %v1012_v6, %v920_v12 }
 0x241   :  { %v1287_v35 = vpop.eup %1286  ;;  %v883_v10 = vmul.f32 0.0051020407, %v854_v25 }
 0x242   :  { %v922_v22 = vmul.f32 %v1287_v35, %v892_v55  ;;  %1051 = vperm.xlu2 %1281, %v1034_v27   ;;  %vm928_vm8 = vweird.f32 %v1287_v35  ;;  %v1015_v27 = vld [vmem:[%s2575_s2 + $0x20] sm:$0xff] }
 0x243   :  { %v1289_v3 = vpop.eup %1288  ;;  %v894_v57 = vadd.f32 1e-05, %v883_v10  ;;  %vm929_vm11 = vmor %vm927_vm9, %vm928_vm8 }
 0x244   :  { %v923_v23 = vmul.f32 %v1287_v35, %v922_v22  ;;  %v932_v58 = vmul.f32 %v1289_v3, %v893_v31  ;;  %vm938_vm10 = vweird.f32 %v1289_v3 }
 0x245   :  { %1290 = vrsqrt.f32 %v894_v57  ;;  %vm939_vm13 = vmor %vm937_vm12, %vm938_vm10  ;;  %vm947_vm15 = vweird.f32 %v894_v57 }
 0x246   :  { %v924_v46 = vmul.f32 0.5, %v923_v23  ;;  %v933_v40 = vmul.f32 %v1289_v3, %v932_v58 }
 0x248   :  { %v925_v45 = vsub.f32 1.5, %v924_v46  ;;  %v934_v30 = vmul.f32 0.5, %v933_v40  ;;  %v858_v14 = vpop.xlane.xlu1 %857 }
 0x249   :  { %v884_v59 = vmul.f32 0.0051020407, %v858_v14  ;;  %v1016_v14 = vld [vmem:[%s2575_s2 + $0x28] sm:$0xff] }
 0x24a   :  { %v935_v47 = vsub.f32 1.5, %v934_v30  ;;  %v926_v62 = vmul.f32 %v1287_v35, %v925_v45 }
 0x24b   :  { %v1291_v39 = vpop.eup %1290  ;;  %v895_v53 = vadd.f32 1e-05, %v884_v59 }
 0x24c   :  { %v942_v8 = vmul.f32 %v1291_v39, %v894_v57  ;;  %v930_v9 = vsel %vm929_vm11, %v1287_v35, %v926_v62  ;;  %v936_v43 = vmul.f32 %v1289_v3, %v935_v47  ;;  %vm948_vm14 = vweird.f32 %v1291_v39 }
 0x24d   :  { %1292 = vrsqrt.f32 %v895_v53  ;;  %v1035_v0 = vmul.f32 %v1013_v16, %v930_v9  ;;  %vm949_vm0 = vmor %vm947_vm15, %vm948_vm14  ;;  %vm957_vm3 = vweird.f32 %v895_v53 }
 0x24e   :  { %v943_v55 = vmul.f32 %v1291_v39, %v942_v8  ;;  %v940_v36 = vsel %vm939_vm13, %v1289_v3, %v936_v43 }
 0x24f   :  { %1056 = vperm.xlu0 %1280, %v1035_v0   ;;  %v1036_v49 = vmul.f32 %v1014_v18, %v940_v36 }
 0x250   :  { %v944_v7 = vmul.f32 0.5, %v943_v55  ;;  %v862_v54 = vpop.xlane.xlu2 %861  ;;  %v1017_v55 = vld [vmem:[%s2575_s2 + $0x30] sm:$0xff] }
 0x251   :  { %v885_v52 = vmul.f32 0.0051020407, %v862_v54  ;;  %1061 = vperm.xlu2 %1281, %v1036_v49  }
 0x252   :  { %v945_v26 = vsub.f32 1.5, %v944_v7 }
 0x253   :  { %v1293_v31 = vpop.eup %1292  ;;  %v896_v6 = vadd.f32 1e-05, %v885_v52 }
 0x254   :  { %v952_v12 = vmul.f32 %v1293_v31, %v895_v53  ;;  %v946_v25 = vmul.f32 %v1291_v39, %v945_v26  ;;  %vm958_vm2 = vweird.f32 %v1293_v31 }
 0x255   :  { %1294 = vrsqrt.f32 %v896_v6  ;;  %vm959_vm4 = vmor %vm957_vm3, %vm958_vm2  ;;  %vm967_vm6 = vweird.f32 %v896_v6 }
 0x256   :  { %v953_v35 = vmul.f32 %v1293_v31, %v952_v12  ;;  %v950_v10 = vsel %vm949_vm0, %v1291_v39, %v946_v25 }
 0x257   :  { %v1037_v22 = vmul.f32 %v1015_v27, %v950_v10 }
 0x258   :  { %v954_v3 = vmul.f32 0.5, %v953_v35  ;;  %v866_v23 = vpop.xlane.xlu0 %865  ;;  %v1018_v35 = vld [vmem:[%s2575_s2 + $0x38] sm:$0xff] }
 0x259   :  { %v886_v58 = vmul.f32 0.0051020407, %v866_v23  ;;  %1066 = vperm.xlu1 %1279, %v1037_v22  }
 0x25a   :  { %v955_v46 = vsub.f32 1.5, %v954_v3 }
 0x25b   :  { %v1295_v40 = vpop.eup %1294  ;;  %v897_v45 = vadd.f32 1e-05, %v886_v58 }
 0x25c   :  { %v962_v57 = vmul.f32 %v1295_v40, %v896_v6  ;;  %v956_v30 = vmul.f32 %v1293_v31, %v955_v46  ;;  %vm968_vm5 = vweird.f32 %v1295_v40 }
 0x25d   :  { %1296 = vrsqrt.f32 %v897_v45  ;;  %vm969_vm7 = vmor %vm967_vm6, %vm968_vm5  ;;  %vm977_vm9 = vweird.f32 %v897_v45 }
 0x25e   :  { %v963_v59 = vmul.f32 %v1295_v40, %v962_v57  ;;  %v960_v47 = vsel %vm959_vm4, %v1293_v31, %v956_v30 }
 0x25f   :  { %v1038_v62 = vmul.f32 %v1016_v14, %v960_v47 }
 0x260   :  { %v964_v16 = vmul.f32 0.5, %v963_v59  ;;  %v870_v39 = vpop.xlane.xlu1 %869  ;;  %v1019_v59 = vld [vmem:[%s2575_s2 + $0x40] sm:$0xff] }
 0x261   :  { %v887_v8 = vmul.f32 0.0051020407, %v870_v39  ;;  %1071 = vperm.xlu2 %1281, %v1038_v62  }
 0x262   :  { %v965_v9 = vsub.f32 1.5, %v964_v16 }
 0x263   :  { %v1297_v43 = vpop.eup %1296  ;;  %v898_v18 = vadd.f32 1e-05, %v887_v8 }
 0x264   :  { %v972_v53 = vmul.f32 %v1297_v43, %v897_v45  ;;  %v966_v0 = vmul.f32 %v1295_v40, %v965_v9  ;;  %vm978_vm8 = vweird.f32 %v1297_v43 }
 0x265   :  { %1298 = vrsqrt.f32 %v898_v18  ;;  %vm979_vm10 = vmor %vm977_vm9, %vm978_vm8  ;;  %vm987_vm12 = vweird.f32 %v898_v18 }
 0x266   :  { %v973_v36 = vmul.f32 %v1297_v43, %v972_v53  ;;  %v970_v49 = vsel %vm969_vm7, %v1295_v40, %v966_v0 }
 0x267   :  { %v1039_v7 = vmul.f32 %v1017_v55, %v970_v49  ;;  %v1031_v55 = vld [vmem:[%s2575_s2 + $0xa0] sm:$0xff] }
 0x268   :  { %v974_v54 = vmul.f32 0.5, %v973_v36  ;;  %v874_v52 = vpop.xlane.xlu2 %873 }
 0x269   :  { %v888_v26 = vmul.f32 0.0051020407, %v874_v52  ;;  %1076 = vperm.xlu1 %1279, %v1039_v7  }
 0x26a   :  { %v975_v31 = vsub.f32 1.5, %v974_v54 }
 0x26b   :  { %v1299_v12 = vpop.eup %1298  ;;  %v899_v25 = vadd.f32 1e-05, %v888_v26  ;;  %v1021_v26 = vld [vmem:[%s2575_s2 + $0x50] sm:$0xff] }
 0x26c   :  { %v982_v6 = vmul.f32 %v1299_v12, %v898_v18  ;;  %v976_v27 = vmul.f32 %v1297_v43, %v975_v31  ;;  %vm988_vm11 = vweird.f32 %v1299_v12  ;;  %v1020_v18 = vld [vmem:[%s2575_s2 + $0x48] sm:$0xff] }
 0x26d   :  { %1300 = vrsqrt.f32 %v899_v25  ;;  %vm989_vm13 = vmor %vm987_vm12, %vm988_vm11  ;;  %vm997_vm15 = vweird.f32 %v899_v25 }
 0x26e   :  { %v983_v10 = vmul.f32 %v1299_v12, %v982_v6  ;;  %v980_v22 = vsel %vm979_vm10, %v1297_v43, %v976_v27  ;;  %v1030_v6 = vld [vmem:[%s2575_s2 + $0x98] sm:$0xff] }
 0x26f   :  { %v1040_v3 = vmul.f32 %v1018_v35, %v980_v22 }
 0x270   :  { %v984_v23 = vmul.f32 0.5, %v983_v10  ;;  %v878_v58 = vpop.xlane.xlu0 %877 }
 0x271   :  { %v889_v46 = vmul.f32 0.0051020407, %v878_v58  ;;  %1081 = vperm.xlu2 %1281, %v1040_v3  }
 0x272   :  { %v985_v40 = vsub.f32 1.5, %v984_v23 }
 0x273   :  { %v1301_v57 = vpop.eup %1300  ;;  %v900_v30 = vadd.f32 1e-05, %v889_v46 }
 0x274   :  { %v992_v45 = vmul.f32 %v1301_v57, %v899_v25  ;;  %v986_v14 = vmul.f32 %v1299_v12, %v985_v40  ;;  %vm998_vm14 = vweird.f32 %v1301_v57 }
 0x275   :  { %1302 = vrsqrt.f32 %v900_v30  ;;  %vm999_vm0 = vmor %vm997_vm15, %vm998_vm14  ;;  %vm1007_vm3 = vweird.f32 %v900_v30 }
 0x276   :  { %v993_v47 = vmul.f32 %v1301_v57, %v992_v45  ;;  %v990_v62 = vsel %vm989_vm13, %v1299_v12, %v986_v14  ;;  %v1032_v12 = vld [vmem:[%s2575_s2 + $0xa8] sm:$0xff] }
 0x277   :  { %v1041_v16 = vmul.f32 %v1019_v59, %v990_v62 }
 0x278   :  { %v994_v39 = vmul.f32 0.5, %v993_v47 }
 0x279   :  { %1086 = vperm.xlu1 %1279, %v1041_v16  }
 0x27a   :  { %v995_v8 = vsub.f32 1.5, %v994_v39 }
 0x27b   :  { %v1303_v9 = vpop.eup %1302 }
 0x27c   :  { %v1002_v43 = vmul.f32 %v1303_v9, %v900_v30  ;;  %v996_v53 = vmul.f32 %v1301_v57, %v995_v8  ;;  %vm1008_vm2 = vweird.f32 %v1303_v9 }
 0x27d   :  { %vm1009_vm4 = vmor %vm1007_vm3, %vm1008_vm2 }
 0x27e   :  { %v1003_v0 = vmul.f32 %v1303_v9, %v1002_v43  ;;  %v1000_v36 = vsel %vm999_vm0, %v1301_v57, %v996_v53 }
 0x27f   :  { %v1042_v49 = vmul.f32 %v1020_v18, %v1000_v36 }
 0x280   :  { %v1004_v7 = vmul.f32 0.5, %v1003_v0 }
 0x281   :  { %1168 = vperm.xlu1 %1279, %v1031_v55   ;;  %1091 = vperm.xlu0 %1280, %v1042_v49  }
 0x282   :  { %v1005_v54 = vsub.f32 1.5, %v1004_v7 }
 0x284   :  { %v1006_v52 = vmul.f32 %v1303_v9, %v1005_v54 }
 0x286   :  { %v1010_v31 = vsel %vm1009_vm4, %v1303_v9, %v1006_v52 }
 0x287   :  { %v1043_v25 = vmul.f32 %v1021_v26, %v1010_v31 }
 0x289   :  { %1096 = vperm.xlu2 %1281, %v1043_v25   ;;  %1173 = vperm.xlu0 %1280, %v1032_v12  }
 0x291   :  { %1163 = vperm.xlu2 %1281, %v1030_v6  }
 0x29c   :  { %v1052_v27 = vpop.permute.xlu2 %1051 }
 0x29d   :  { %v1101_v35 = vmul.f32 %v1052_v27, %v2298_v20  ;;  %v1102_v10 = vmul.f32 %v1052_v27, %v2301_v1 }
 0x29f   :  { %v1178_v22 = vadd.f32 %v2280_v38, %v1101_v35  ;;  %v1179_v3 = vadd.f32 %v2280_v38, %v1102_v10 }
 0x2a1   :  { %1200 = vst [vmem:[%s2576_s3 + $0x10] sm:$0xff] %v1178_v22 }
 0x2a2   :  { %1201 = vst.msk [vmem:[%s2576_s3 + $0x18] sm:$0xff] %vm735_vm1, %v1179_v3 }
 0x2ab   :  { %v1062_v23 = vpop.permute.xlu2 %1061 }
 0x2ac   :  { %v1105_v58 = vmul.f32 %v1062_v23, %v2321_v61  ;;  %v1106_v20 = vmul.f32 %v1062_v23, %v2324_v34 }
 0x2ae   :  { %v1182_v1 = vadd.f32 %v2292_v48, %v1105_v58  ;;  %v1183_v46 = vadd.f32 %v2292_v48, %v1106_v20  ;;  %v1159_v48 = vpop.permute.xlu0 %1158 }
 0x2af   :  { %v1047_v38 = vpop.permute.xlu1 %1046 }
 0x2b0   :  { %1204 = vst [vmem:[%s2576_s3 + $0x30] sm:$0xff] %v1182_v1  ;;  %v1099_v40 = vmul.f32 %v1047_v38, %v2288_v37  ;;  %v1100_v61 = vmul.f32 %v1047_v38, %v2285_v50 }
 0x2b1   :  { %1205 = vst.msk [vmem:[%s2576_s3 + $0x38] sm:$0xff] %vm735_vm1, %v1183_v46 }
 0x2b2   :  { %v1176_v34 = vadd.f32 %v2282_v33, %v1099_v40  ;;  %v1177_v57 = vadd.f32 %v2282_v33, %v1100_v61 }
 0x2b4   :  { %1198 = vst [vmem:[%s2576_s3] sm:$0xff] %v1176_v34 }
 0x2b5   :  { %1199 = vst.msk [vmem:[%s2576_s3 + $0x8] sm:$0xff] %vm735_vm1, %v1177_v57 }
 0x2bb   :  { %v1072_v30 = vpop.permute.xlu2 %1071 }
 0x2bc   :  { %v1109_v45 = vmul.f32 %v1072_v30, %v2344_v28  ;;  %v1110_v37 = vmul.f32 %v1072_v30, %v2347_v2 }
 0x2be   :  { %v1186_v50 = vadd.f32 %v2412_v56, %v1109_v45  ;;  %v1187_v14 = vadd.f32 %v2412_v56, %v1110_v37 }
 0x2c0   :  { %1208 = vst [vmem:[%s2576_s3 + $0x50] sm:$0xff] %v1186_v50 }
 0x2c1   :  { %1209 = vst.msk [vmem:[%s2576_s3 + $0x58] sm:$0xff] %vm735_vm1, %v1187_v14  ;;  %v1057_v33 = vpop.permute.xlu0 %1056 }
 0x2c2   :  { %v1103_v59 = vmul.f32 %v1057_v33, %v2312_v42  ;;  %v1104_v28 = vmul.f32 %v1057_v33, %v2309_v19 }
 0x2c4   :  { %v1180_v2 = vadd.f32 %v2316_v51, %v1103_v59  ;;  %v1181_v47 = vadd.f32 %v2316_v51, %v1104_v28 }
 0x2c6   :  { %1202 = vst [vmem:[%s2576_s3 + $0x20] sm:$0xff] %v1180_v2 }
 0x2c7   :  { %1203 = vst.msk [vmem:[%s2576_s3 + $0x28] sm:$0xff] %vm735_vm1, %v1181_v47 }
 0x2cb   :  { %v1067_v56 = vpop.permute.xlu1 %1066  ;;  %v1082_v62 = vpop.permute.xlu2 %1081 }
 0x2cc   :  { %v1107_v16 = vmul.f32 %v1067_v56, %v2333_v63  ;;  %v1108_v42 = vmul.f32 %v1067_v56, %v2336_v15  ;;  %v1113_v19 = vmul.f32 %v1082_v62, %v2366_v60  ;;  %v1114_v39 = vmul.f32 %v1082_v62, %v2369_v4 }
 0x2ce   :  { %v1184_v51 = vadd.f32 %v2414_v17, %v1107_v16  ;;  %v1185_v8 = vadd.f32 %v2414_v17, %v1108_v42  ;;  %v1190_v9 = vadd.f32 %v1159_v48, %v1113_v19  ;;  %v1191_v43 = vadd.f32 %v1159_v48, %v1114_v39 }
 0x2d0   :  { %1206 = vst [vmem:[%s2576_s3 + $0x40] sm:$0xff] %v1184_v51 }
 0x2d1   :  { %1207 = vst.msk [vmem:[%s2576_s3 + $0x48] sm:$0xff] %vm735_vm1, %v1185_v8 }
 0x2d2   :  { %1212 = vst [vmem:[%s2576_s3 + $0x70] sm:$0xff] %v1190_v9 }
 0x2d3   :  { %1213 = vst.msk [vmem:[%s2576_s3 + $0x78] sm:$0xff] %vm735_vm1, %v1191_v43 }
 0x2db   :  { %v1077_v63 = vpop.permute.xlu1 %1076 }
 0x2dc   :  { %v1111_v15 = vmul.f32 %v1077_v63, %v2355_v13  ;;  %v1112_v60 = vmul.f32 %v1077_v63, %v2358_v24 }
 0x2de   :  { %v1188_v4 = vadd.f32 %v2416_v5, %v1111_v15  ;;  %v1189_v17 = vadd.f32 %v2416_v5, %v1112_v60 }
 0x2e0   :  { %1210 = vst [vmem:[%s2576_s3 + $0x60] sm:$0xff] %v1188_v4 }
 0x2e1   :  { %1211 = vst.msk [vmem:[%s2576_s3 + $0x68] sm:$0xff] %vm735_vm1, %v1189_v17 }
 0x2e3   :  { %v1097_v53 = vpop.permute.xlu2 %1096 }
 0x2e4   :  { %v1119_v52 = vmul.f32 %v1097_v53, %v2399_v11  ;;  %v1120_v26 = vmul.f32 %v1097_v53, %v2402_v44 }
 0x2eb   :  { %v1087_v18 = vpop.permute.xlu1 %1086  ;;  %v1164_v24 = vpop.permute.xlu2 %1163 }
 0x2ec   :  { %v1115_v0 = vmul.f32 %v1087_v18, %v2377_v29  ;;  %v1116_v13 = vmul.f32 %v1087_v18, %v2380_v41 }
 0x2ee   :  { %v1192_v55 = vadd.f32 %v1164_v24, %v1115_v0  ;;  %v1193_v36 = vadd.f32 %v1164_v24, %v1116_v13 }
 0x2f0   :  { %1214 = vst [vmem:[%s2576_s3 + $0x80] sm:$0xff] %v1192_v55 }
 0x2f1   :  { %1215 = vst.msk [vmem:[%s2576_s3 + $0x88] sm:$0xff] %vm735_vm1, %v1193_v36 }
 0x2f3   :  { %v1092_v5 = vpop.permute.xlu0 %1091  ;;  %v1169_v29 = vpop.permute.xlu1 %1168 }
 0x2f4   :  { %v1117_v49 = vmul.f32 %v1092_v5, %v2388_v32  ;;  %v1118_v7 = vmul.f32 %v1092_v5, %v2391_v21 }
 0x2f6   :  { %v1194_v54 = vadd.f32 %v1169_v29, %v1117_v49  ;;  %v1195_v41 = vadd.f32 %v1169_v29, %v1118_v7 }
 0x2f8   :  { %1216 = vst [vmem:[%s2576_s3 + $0x90] sm:$0xff] %v1194_v54 }
 0x2f9   :  { %1217 = vst.msk [vmem:[%s2576_s3 + $0x98] sm:$0xff] %vm735_vm1, %v1195_v41 }
 0x2fb   :  { %v1174_v31 = vpop.permute.xlu0 %1173 }
 0x2fc   :  { %v1196_v32 = vadd.f32 %v1174_v31, %v1119_v52  ;;  %v1197_v12 = vadd.f32 %v1174_v31, %v1120_v26 }
 0x2fe   :  { %1218 = vst [vmem:[%s2576_s3 + $0xa0] sm:$0xff] %v1196_v32 }
 0x2ff   :  { %1219 = vst.msk [vmem:[%s2576_s3 + $0xa8] sm:$0xff] %vm735_vm1, %v1197_v12 }

</bundles_post_ra>
